<compile_context>
chip_gen: v6e
topology: v6e:2x2x1
jax: 0.10.0
libtpu: 0.0.40
codegen_flags: <defaults>
</compile_context>

<pallas_src>
import jax
import jax.numpy as jnp
import numpy as np
from jax.experimental import pallas as pl
from jax.experimental.pallas import tpu as pltpu

D_EMBED = 64
N_SCALES = 16                      # Space2Vec multi-scale frequencies
N_DIRS = 3                         # 3 unit directions (grid-cell encoding)
N_FREQ = N_SCALES * N_DIRS         # 48
F_SPACE = 2 * N_FREQ               # 96 (sin + cos)
KV = 384                           # fused K per packed visit (3 x 128, padded)
TM_DEFAULT = 4096                  # row tile (rows of the original (N, 6) view)


def _source_input_kernel(vv_ref, a2_ref, off_ref, tw_ref, tb_ref, wbd_ref,
                         bias_ref, out_ref, slab_ref):
    """vv_ref: (tm2, 12) two packed visits per row; slab_ref: (tm2, 2*KV) bf16
    operand scratch; out_ref: (tm2, 128) = [visit 2r | visit 2r+1] embeddings."""
    tm2 = vv_ref.shape[0]
    lane = jax.lax.broadcasted_iota(jnp.int32, (tm2, 128), 1)
    lo_half = lane < 64                                     # lanes 0..63

    for half in range(2):                                   # even / odd visit
        c = 6 * half                                        # input column base
        base = KV * half                                    # slab column base

        # ---- Space2Vec: 128-wide padded phase, one sin covers sin AND cos --
        x = vv_ref[:, c + 0:c + 1]
        y = vv_ref[:, c + 1:c + 2]
        phase = x * a2_ref[0:1, :] + y * a2_ref[1:2, :] + off_ref[0:1, :]
        slab_ref[:, base:base + 128] = jnp.sin(phase).astype(jnp.bfloat16)

        # ---- linear Time2Vec channels: raw t operand columns (weight rows
        # carry w0*Wp[0,:]); pad lanes 101..127 stay sin(0)=0 w/ zero weights.
        slab_ref[:, base + F_SPACE:base + F_SPACE + 4] = (
            vv_ref[:, c + 2:c + 6].astype(jnp.bfloat16))

        # ---- Time2Vec sin channels: two encoders share each 128-lane sin ---
        for pair in range(2):                  # pair 0: (start|stop), 1: (dur|trav)
            t_lo = vv_ref[:, c + 2 + 2 * pair:c + 3 + 2 * pair]
            t_hi = vv_ref[:, c + 3 + 2 * pair:c + 4 + 2 * pair]
            t = jnp.where(lo_half, t_lo, t_hi)              # (tm2, 128)
            full = t * tw_ref[pair:pair + 1, :] + tb_ref[pair:pair + 1, :]
            s = base + 128 * (pair + 1)
            slab_ref[:, s:s + 128] = jnp.sin(full).astype(jnp.bfloat16)

    # ---- single fused projection against the block-diagonal (2*KV, 128) weight
    out_ref[...] = (
        jnp.dot(slab_ref[...], wbd_ref[...], preferred_element_type=jnp.float32)
        + bias_ref[...])


def _prepare_params(p):
    """Pre-stack everything into one block-diagonal bf16 weight + f32 bias."""
    d = D_EMBED
    wp = p["Wp"].astype(jnp.float32)                        # (5d, d)
    wp_loc, wp_start, wp_stop, wp_dur, wp_trav = [
        wp[i * d:(i + 1) * d] for i in range(5)]
    ws = p["Ws"].astype(jnp.float32)                        # (96, d)

    wsin = ws[:N_FREQ] @ wp_loc                             # (48, d) = Ws_sin @ Wp_loc
    wcos = ws[N_FREQ:] @ wp_loc                             # (48, d)

    # Space phase built 128 wide: [A | A | 0]; cos(x) = sin(x + pi/2).
    a = p["A"].astype(jnp.float32)                          # (2, 48)
    a2 = jnp.zeros((2, 128), jnp.float32)
    a2 = a2.at[:, :N_FREQ].set(a).at[:, N_FREQ:F_SPACE].set(a)
    off = jnp.zeros((1, 128), jnp.float32).at[:, N_FREQ:F_SPACE].set(np.pi / 2)

    # Paired Time2Vec weights: row 0 = (start|stop), row 1 = (dur|trav).
    tw_pair = jnp.stack([
        jnp.concatenate([p["tw"][0], p["tw"][0]]),
        jnp.concatenate([p["dw"][0], p["vw"][0]])]).astype(jnp.float32)   # (2, 128)
    tb_pair = jnp.stack([
        jnp.concatenate([p["tb"][0], p["tb"][0]]),
        jnp.concatenate([p["db"][0], p["vb"][0]])]).astype(jnp.float32)   # (2, 128)

    wp_t2v = jnp.stack([wp_start, wp_stop, wp_dur, wp_trav])              # (4, d, d)
    w0 = jnp.stack([p["tw"][0, 0], p["tw"][0, 0], p["dw"][0, 0], p["vw"][0, 0]])
    b0 = jnp.stack([p["tb"][0, 0], p["tb"][0, 0], p["db"][0, 0], p["vb"][0, 0]])
    wlin = w0[:, None] * wp_t2v[:, 0, :]                                  # (4, d)
    bias = (p["bp"].astype(jnp.float32)
            + p["bs"].astype(jnp.float32) @ wp_loc
            + jnp.sum(b0[:, None] * wp_t2v[:, 0, :], axis=0, keepdims=True))
    wp_t2v0 = wp_t2v.at[:, 0, :].set(0.0)       # sin channel: zero row 0

    # Per-visit fused weight, K layout:
    #   [0:48) sin   [48:96) cos   [96:100) raw t (lin)   [100:128) zero pad
    #   [128:192) start  [192:256) stop  [256:320) dur  [320:384) travel
    wv = jnp.zeros((KV, d), jnp.float32)
    wv = wv.at[0:N_FREQ].set(wsin)
    wv = wv.at[N_FREQ:F_SPACE].set(wcos)
    wv = wv.at[F_SPACE:F_SPACE + 4].set(wlin)
    for i in range(4):
        wv = wv.at[128 + 64 * i:192 + 64 * i].set(wp_t2v0[i])

    # Block-diagonal (2*KV, 128): even visit -> lanes 0..63, odd -> 64..127.
    wbd = jnp.zeros((2 * KV, 2 * d), jnp.float32)
    wbd = wbd.at[:KV, :d].set(wv).at[KV:, d:].set(wv)

    return {
        "A2": a2, "OFF": off, "TW": tw_pair, "TB": tb_pair,
        "WBD": wbd.astype(jnp.bfloat16),
        "BIAS": jnp.concatenate([bias, bias], axis=-1).astype(jnp.float32),
    }


def _round_up(v, m):
    return ((v + m - 1) // m) * m


def source_input_forward(visits, params, *, tm=TM_DEFAULT):
    """visits: (B, S, 6) float32 -> (B, S, D_EMBED) float32."""
    b, s, f = visits.shape
    assert f == 6
    d = D_EMBED
    n = b * s

    # Big tiles amortize the ~0.35us/step pipeline overhead, but keep >= ~4 grid
    # steps so both v7x TensorCores get work and the BlockSpec pipeline overlaps
    # DMA.  tm stays a multiple of 32 so tm2 = tm/2 is a full bf16 sublane tile
    # and the packed (n/2, 128) -> (n, 64) reshape is a pure bitcast.
    tm = min(tm, _round_up(pl.cdiv(n, 4), 32))
    tm = _round_up(max(tm, 32), 32)
    n_pad = pl.cdiv(n, tm) * tm

    fp = _prepare_params(params)

    x = visits.reshape(n, 6).astype(jnp.float32)
    if n_pad != n:
        # TODO(synk): for very large ragged N, replace this HBM pad copy with a
        # masked store on the final grid step.
        x = jnp.pad(x, ((0, n_pad - n), (0, 0)))
    # Pack two consecutive visits per row (row-major bitcast): the input block
    # is (tm2, 12) and the output block a lane-dense (tm2, 128) slab.
    x2 = x.reshape(n_pad // 2, 12)

    tm2 = tm // 2
    grid = (n_pad // tm,)
    rowtile = lambda i: (i, 0)
    whole = lambda i: (0, 0)

    out = pl.pallas_call(
        _source_input_kernel,
        out_shape=jax.ShapeDtypeStruct((n_pad // 2, 2 * d), jnp.float32),
        grid_spec=pltpu.PrefetchScalarGridSpec(
            num_scalar_prefetch=0,
            grid=grid,
            in_specs=[
                pl.BlockSpec((tm2, 12), rowtile),           # packed visits
                pl.BlockSpec((2, 128), whole),              # A2 (padded space freqs)
                pl.BlockSpec((1, 128), whole),              # sin/cos phase offset
                pl.BlockSpec((2, 128), whole),              # paired Time2Vec w
                pl.BlockSpec((2, 128), whole),              # paired Time2Vec b
                pl.BlockSpec((2 * KV, 2 * d), whole),       # fused block-diag weight
                pl.BlockSpec((1, 2 * d), whole),            # folded bias (f32)
            ],
            out_specs=pl.BlockSpec((tm2, 2 * d), rowtile),
            scratch_shapes=[pltpu.VMEM((tm2, 2 * KV), jnp.bfloat16)],
        ),
        compiler_params=pltpu.CompilerParams(
            dimension_semantics=("parallel",),              # megacore on v7x
            vmem_limit_bytes=32 * 1024 * 1024),
    )(x2, fp["A2"], fp["OFF"], fp["TW"], fp["TB"], fp["WBD"], fp["BIAS"])

    return out.reshape(n_pad, d)[:n].reshape(b, s, d)


def init_params(lambda_min=1.0, lambda_max=1000.0, seed=42):
    """Deterministic synthetic parameters (shapes match the PyTorch module)."""
    d = D_EMBED
    key = jax.random.PRNGKey(seed)
    ks = jax.random.split(key, 12)

    # Space2Vec frequency matrix A: (2, N_FREQ).
    scales = lambda_min * (lambda_max / lambda_min) ** (
        np.arange(N_SCALES) / max(N_SCALES - 1, 1))
    angles = np.array([0.0, 2 * np.pi / 3, 4 * np.pi / 3])
    dirs = np.stack([np.cos(angles), np.sin(angles)], axis=0)  # (2, 3)
    a = (dirs[:, None, :] / scales[None, :, None]).reshape(2, N_FREQ)

    def lin_init(k, shape, fan_in):
        bound = 1.0 / np.sqrt(fan_in)
        return jax.random.uniform(k, shape, jnp.float32, -bound, bound)

    return {
        "A": jnp.asarray(a, jnp.float32),
        "Ws": lin_init(ks[0], (F_SPACE, d), F_SPACE),
        "bs": lin_init(ks[1], (1, d), F_SPACE),
        "tw": jax.random.normal(ks[2], (1, d), jnp.float32),
        "tb": jax.random.normal(ks[3], (1, d), jnp.float32),
        "dw": jax.random.normal(ks[4], (1, d), jnp.float32),
        "db": jax.random.normal(ks[5], (1, d), jnp.float32),
        "vw": jax.random.normal(ks[6], (1, d), jnp.float32),
        "vb": jax.random.normal(ks[7], (1, d), jnp.float32),
        "Wp": lin_init(ks[8], (5 * d, d), 5 * d),
        "bp": lin_init(ks[9], (1, d), 5 * d),
    }


def source_input_ref(visits, p):
    """Plain-JAX f32 reference of the same forward (for validation)."""
    x = visits.astype(jnp.float32)
    loc = x[..., 0:2]
    phase = loc @ p["A"]
    feats = jnp.concatenate([jnp.sin(phase), jnp.cos(phase)], axis=-1)
    loc_enc = feats @ p["Ws"] + p["bs"][0]

    def t2v(t, w, b):
        full = t[..., None] * w[0] + b[0]
        return jnp.concatenate([full[..., :1], jnp.sin(full[..., 1:])], axis=-1)

    start_enc = t2v(x[..., 2], p["tw"], p["tb"])
    stop_enc = t2v(x[..., 3], p["tw"], p["tb"])
    dur_enc = t2v(x[..., 4], p["dw"], p["db"])
    trav_enc = t2v(x[..., 5], p["vw"], p["vb"])
    combined = jnp.concatenate(
        [loc_enc, start_enc, stop_enc, dur_enc, trav_enc], axis=-1)
    return combined @ p["Wp"] + p["bp"][0]


if __name__ == "__main__":
    B, S = 2, 8
    key = jax.random.PRNGKey(0)
    visits = jax.random.uniform(key, (B, S, 6), jnp.float32, 0.0, 10.0)

    params = init_params()
    out = jax.block_until_ready(source_input_forward(visits, params))
    ref = source_input_ref(visits, params)

    assert out.shape == (B, S, D_EMBED)
    # bf16 MXU operands (bounded sin values, f32 accumulation) -> looser tol.
    np.testing.assert_allclose(np.asarray(out), np.asarray(ref),
                               rtol=2e-2, atol=2e-2)
    print("KERNEL_OK")
</pallas_src>

<mosaic_0001>
module attributes {stable_mosaic.version = 11 : i64} {
  func.func @_source_input_kernel(%arg0: i32, %arg1: memref<16x12xf32, #tpu.memory_space<vmem>>, %arg2: memref<2x128xf32, #tpu.memory_space<vmem>>, %arg3: memref<1x128xf32, #tpu.memory_space<vmem>>, %arg4: memref<2x128xf32, #tpu.memory_space<vmem>>, %arg5: memref<2x128xf32, #tpu.memory_space<vmem>>, %arg6: memref<768x128xbf16, #tpu.memory_space<vmem>>, %arg7: memref<1x128xf32, #tpu.memory_space<vmem>>, %arg8: memref<16x128xf32, #tpu.memory_space<vmem>>, %arg9: memref<16x768xbf16, #tpu.memory_space<vmem>>) attributes {dimension_semantics = [#tpu.dimension_semantics<parallel>], iteration_bounds = array<i64: 1>, scalar_prefetch = 0 : i64, scratch_operands = 1 : i64, tpu.core_type = #tpu.core_type<tc>, window_params = [{transform_indices = @transform_0, window_bounds = array<i64: 16, 12>}, {pipeline_mode = #tpu.pipeline_mode<synchronous>, transform_indices = @transform_1, window_bounds = array<i64: 2, 128>}, {pipeline_mode = #tpu.pipeline_mode<synchronous>, transform_indices = @transform_2, window_bounds = array<i64: 1, 128>}, {pipeline_mode = #tpu.pipeline_mode<synchronous>, transform_indices = @transform_3, window_bounds = array<i64: 2, 128>}, {pipeline_mode = #tpu.pipeline_mode<synchronous>, transform_indices = @transform_4, window_bounds = array<i64: 2, 128>}, {pipeline_mode = #tpu.pipeline_mode<synchronous>, transform_indices = @transform_5, window_bounds = array<i64: 768, 128>}, {pipeline_mode = #tpu.pipeline_mode<synchronous>, transform_indices = @transform_6, window_bounds = array<i64: 1, 128>}, {transform_indices = @transform_7, window_bounds = array<i64: 16, 128>}]} {
    %0 = tpu.iota {dimensions = array<i32: 1>} : vector<16x128xi32>
    %c64_i32 = arith.constant 64 : i32
    %1 = vector.broadcast %c64_i32 : i32 to vector<16x128xi32>
    %2 = arith.cmpi slt, %0, %1 : vector<16x128xi32>
    %c0 = arith.constant 0 : index
    %c0_0 = arith.constant 0 : index
    %3 = vector.load %arg1[%c0, %c0_0] : memref<16x12xf32, #tpu.memory_space<vmem>>, vector<16x1xf32>
    %c0_1 = arith.constant 0 : index
    %c1 = arith.constant 1 : index
    %4 = vector.load %arg1[%c0_1, %c1] : memref<16x12xf32, #tpu.memory_space<vmem>>, vector<16x1xf32>
    %c0_2 = arith.constant 0 : index
    %c0_3 = arith.constant 0 : index
    %5 = vector.load %arg2[%c0_2, %c0_3] : memref<2x128xf32, #tpu.memory_space<vmem>>, vector<1x128xf32>
    %6 = vector.broadcast %3 : vector<16x1xf32> to vector<16x128xf32>
    %7 = vector.broadcast %5 : vector<1x128xf32> to vector<16x128xf32>
    %8 = arith.mulf %6, %7 : vector<16x128xf32>
    %c1_4 = arith.constant 1 : index
    %c0_5 = arith.constant 0 : index
    %9 = vector.load %arg2[%c1_4, %c0_5] : memref<2x128xf32, #tpu.memory_space<vmem>>, vector<1x128xf32>
    %10 = vector.broadcast %4 : vector<16x1xf32> to vector<16x128xf32>
    %11 = vector.broadcast %9 : vector<1x128xf32> to vector<16x128xf32>
    %12 = arith.mulf %10, %11 : vector<16x128xf32>
    %13 = arith.addf %8, %12 : vector<16x128xf32>
    %c0_6 = arith.constant 0 : index
    %c0_7 = arith.constant 0 : index
    %14 = vector.load %arg3[%c0_6, %c0_7] : memref<1x128xf32, #tpu.memory_space<vmem>>, vector<1x128xf32>
    %15 = vector.broadcast %14 : vector<1x128xf32> to vector<16x128xf32>
    %16 = arith.addf %13, %15 : vector<16x128xf32>
    %17 = math.sin %16 : vector<16x128xf32>
    %18 = arith.truncf %17 : vector<16x128xf32> to vector<16x128xbf16>
    %c0_8 = arith.constant 0 : index
    %c0_9 = arith.constant 0 : index
    %19 = vector.load %arg9[%c0_8, %c0_9] : memref<16x768xbf16, #tpu.memory_space<vmem>>, vector<16x128xbf16>
    tpu.vector_store %arg9[%c0_8, %c0_9], %18 {strides = array<i32>} : memref<16x768xbf16, #tpu.memory_space<vmem>>, vector<16x128xbf16>,
    %c0_10 = arith.constant 0 : index
    %c2 = arith.constant 2 : index
    %20 = vector.load %arg1[%c0_10, %c2] : memref<16x12xf32, #tpu.memory_space<vmem>>, vector<16x4xf32>
    %21 = arith.truncf %20 : vector<16x4xf32> to vector<16x4xbf16>
    %c0_11 = arith.constant 0 : index
    %c96 = arith.constant 96 : index
    %22 = vector.load %arg9[%c0_11, %c96] : memref<16x768xbf16, #tpu.memory_space<vmem>>, vector<16x4xbf16>
    tpu.vector_store %arg9[%c0_11, %c96], %21 {strides = array<i32>} : memref<16x768xbf16, #tpu.memory_space<vmem>>, vector<16x4xbf16>,
    %c0_12 = arith.constant 0 : index
    %c2_13 = arith.constant 2 : index
    %23 = vector.load %arg1[%c0_12, %c2_13] : memref<16x12xf32, #tpu.memory_space<vmem>>, vector<16x1xf32>
    %c0_14 = arith.constant 0 : index
    %c3 = arith.constant 3 : index
    %24 = vector.load %arg1[%c0_14, %c3] : memref<16x12xf32, #tpu.memory_space<vmem>>, vector<16x1xf32>
    %25 = vector.shape_cast %23 : vector<16x1xf32> to vector<16x1xf32>
    %26 = vector.broadcast %25 : vector<16x1xf32> to vector<16x128xf32>
    %27 = vector.shape_cast %24 : vector<16x1xf32> to vector<16x1xf32>
    %28 = vector.broadcast %27 : vector<16x1xf32> to vector<16x128xf32>
    %29 = arith.select %2, %26, %28 : vector<16x128xi1>, vector<16x128xf32>
    %c0_15 = arith.constant 0 : index
    %c0_16 = arith.constant 0 : index
    %30 = vector.load %arg4[%c0_15, %c0_16] : memref<2x128xf32, #tpu.memory_space<vmem>>, vector<1x128xf32>
    %31 = vector.broadcast %30 : vector<1x128xf32> to vector<16x128xf32>
    %32 = arith.mulf %29, %31 : vector<16x128xf32>
    %c0_17 = arith.constant 0 : index
    %c0_18 = arith.constant 0 : index
    %33 = vector.load %arg5[%c0_17, %c0_18] : memref<2x128xf32, #tpu.memory_space<vmem>>, vector<1x128xf32>
    %34 = vector.broadcast %33 : vector<1x128xf32> to vector<16x128xf32>
    %35 = arith.addf %32, %34 : vector<16x128xf32>
    %36 = math.sin %35 : vector<16x128xf32>
    %37 = arith.truncf %36 : vector<16x128xf32> to vector<16x128xbf16>
    %c0_19 = arith.constant 0 : index
    %c128 = arith.constant 128 : index
    %38 = vector.load %arg9[%c0_19, %c128] : memref<16x768xbf16, #tpu.memory_space<vmem>>, vector<16x128xbf16>
    tpu.vector_store %arg9[%c0_19, %c128], %37 {strides = array<i32>} : memref<16x768xbf16, #tpu.memory_space<vmem>>, vector<16x128xbf16>,
    %c0_20 = arith.constant 0 : index
    %c4 = arith.constant 4 : index
    %39 = vector.load %arg1[%c0_20, %c4] : memref<16x12xf32, #tpu.memory_space<vmem>>, vector<16x1xf32>
    %c0_21 = arith.constant 0 : index
    %c5 = arith.constant 5 : index
    %40 = vector.load %arg1[%c0_21, %c5] : memref<16x12xf32, #tpu.memory_space<vmem>>, vector<16x1xf32>
    %41 = vector.shape_cast %39 : vector<16x1xf32> to vector<16x1xf32>
    %42 = vector.broadcast %41 : vector<16x1xf32> to vector<16x128xf32>
    %43 = vector.shape_cast %40 : vector<16x1xf32> to vector<16x1xf32>
    %44 = vector.broadcast %43 : vector<16x1xf32> to vector<16x128xf32>
    %45 = arith.select %2, %42, %44 : vector<16x128xi1>, vector<16x128xf32>
    %c1_22 = arith.constant 1 : index
    %c0_23 = arith.constant 0 : index
    %46 = vector.load %arg4[%c1_22, %c0_23] : memref<2x128xf32, #tpu.memory_space<vmem>>, vector<1x128xf32>
    %47 = vector.broadcast %46 : vector<1x128xf32> to vector<16x128xf32>
    %48 = arith.mulf %45, %47 : vector<16x128xf32>
    %c1_24 = arith.constant 1 : index
    %c0_25 = arith.constant 0 : index
    %49 = vector.load %arg5[%c1_24, %c0_25] : memref<2x128xf32, #tpu.memory_space<vmem>>, vector<1x128xf32>
    %50 = vector.broadcast %49 : vector<1x128xf32> to vector<16x128xf32>
    %51 = arith.addf %48, %50 : vector<16x128xf32>
    %52 = math.sin %51 : vector<16x128xf32>
    %53 = arith.truncf %52 : vector<16x128xf32> to vector<16x128xbf16>
    %c0_26 = arith.constant 0 : index
    %c256 = arith.constant 256 : index
    %54 = vector.load %arg9[%c0_26, %c256] : memref<16x768xbf16, #tpu.memory_space<vmem>>, vector<16x128xbf16>
    tpu.vector_store %arg9[%c0_26, %c256], %53 {strides = array<i32>} : memref<16x768xbf16, #tpu.memory_space<vmem>>, vector<16x128xbf16>,
    %c0_27 = arith.constant 0 : index
    %c6 = arith.constant 6 : index
    %55 = vector.load %arg1[%c0_27, %c6] : memref<16x12xf32, #tpu.memory_space<vmem>>, vector<16x1xf32>
    %c0_28 = arith.constant 0 : index
    %c7 = arith.constant 7 : index
    %56 = vector.load %arg1[%c0_28, %c7] : memref<16x12xf32, #tpu.memory_space<vmem>>, vector<16x1xf32>
    %c0_29 = arith.constant 0 : index
    %c0_30 = arith.constant 0 : index
    %57 = vector.load %arg2[%c0_29, %c0_30] : memref<2x128xf32, #tpu.memory_space<vmem>>, vector<1x128xf32>
    %58 = vector.broadcast %55 : vector<16x1xf32> to vector<16x128xf32>
    %59 = vector.broadcast %57 : vector<1x128xf32> to vector<16x128xf32>
    %60 = arith.mulf %58, %59 : vector<16x128xf32>
    %c1_31 = arith.constant 1 : index
    %c0_32 = arith.constant 0 : index
    %61 = vector.load %arg2[%c1_31, %c0_32] : memref<2x128xf32, #tpu.memory_space<vmem>>, vector<1x128xf32>
    %62 = vector.broadcast %56 : vector<16x1xf32> to vector<16x128xf32>
    %63 = vector.broadcast %61 : vector<1x128xf32> to vector<16x128xf32>
    %64 = arith.mulf %62, %63 : vector<16x128xf32>
    %65 = arith.addf %60, %64 : vector<16x128xf32>
    %c0_33 = arith.constant 0 : index
    %c0_34 = arith.constant 0 : index
    %66 = vector.load %arg3[%c0_33, %c0_34] : memref<1x128xf32, #tpu.memory_space<vmem>>, vector<1x128xf32>
    %67 = vector.broadcast %66 : vector<1x128xf32> to vector<16x128xf32>
    %68 = arith.addf %65, %67 : vector<16x128xf32>
    %69 = math.sin %68 : vector<16x128xf32>
    %70 = arith.truncf %69 : vector<16x128xf32> to vector<16x128xbf16>
    %c0_35 = arith.constant 0 : index
    %c384 = arith.constant 384 : index
    %71 = vector.load %arg9[%c0_35, %c384] : memref<16x768xbf16, #tpu.memory_space<vmem>>, vector<16x128xbf16>
    tpu.vector_store %arg9[%c0_35, %c384], %70 {strides = array<i32>} : memref<16x768xbf16, #tpu.memory_space<vmem>>, vector<16x128xbf16>,
    %c0_36 = arith.constant 0 : index
    %c8 = arith.constant 8 : index
    %72 = vector.load %arg1[%c0_36, %c8] : memref<16x12xf32, #tpu.memory_space<vmem>>, vector<16x4xf32>
    %73 = arith.truncf %72 : vector<16x4xf32> to vector<16x4xbf16>
    %c0_37 = arith.constant 0 : index
    %c480 = arith.constant 480 : index
    %74 = vector.load %arg9[%c0_37, %c480] : memref<16x768xbf16, #tpu.memory_space<vmem>>, vector<16x4xbf16>
    tpu.vector_store %arg9[%c0_37, %c480], %73 {strides = array<i32>} : memref<16x768xbf16, #tpu.memory_space<vmem>>, vector<16x4xbf16>,
    %c0_38 = arith.constant 0 : index
    %c8_39 = arith.constant 8 : index
    %75 = vector.load %arg1[%c0_38, %c8_39] : memref<16x12xf32, #tpu.memory_space<vmem>>, vector<16x1xf32>
    %c0_40 = arith.constant 0 : index
    %c9 = arith.constant 9 : index
    %76 = vector.load %arg1[%c0_40, %c9] : memref<16x12xf32, #tpu.memory_space<vmem>>, vector<16x1xf32>
    %77 = vector.shape_cast %75 : vector<16x1xf32> to vector<16x1xf32>
    %78 = vector.broadcast %77 : vector<16x1xf32> to vector<16x128xf32>
    %79 = vector.shape_cast %76 : vector<16x1xf32> to vector<16x1xf32>
    %80 = vector.broadcast %79 : vector<16x1xf32> to vector<16x128xf32>
    %81 = arith.select %2, %78, %80 : vector<16x128xi1>, vector<16x128xf32>
    %c0_41 = arith.constant 0 : index
    %c0_42 = arith.constant 0 : index
    %82 = vector.load %arg4[%c0_41, %c0_42] : memref<2x128xf32, #tpu.memory_space<vmem>>, vector<1x128xf32>
    %83 = vector.broadcast %82 : vector<1x128xf32> to vector<16x128xf32>
    %84 = arith.mulf %81, %83 : vector<16x128xf32>
    %c0_43 = arith.constant 0 : index
    %c0_44 = arith.constant 0 : index
    %85 = vector.load %arg5[%c0_43, %c0_44] : memref<2x128xf32, #tpu.memory_space<vmem>>, vector<1x128xf32>
    %86 = vector.broadcast %85 : vector<1x128xf32> to vector<16x128xf32>
    %87 = arith.addf %84, %86 : vector<16x128xf32>
    %88 = math.sin %87 : vector<16x128xf32>
    %89 = arith.truncf %88 : vector<16x128xf32> to vector<16x128xbf16>
    %c0_45 = arith.constant 0 : index
    %c512 = arith.constant 512 : index
    %90 = vector.load %arg9[%c0_45, %c512] : memref<16x768xbf16, #tpu.memory_space<vmem>>, vector<16x128xbf16>
    tpu.vector_store %arg9[%c0_45, %c512], %89 {strides = array<i32>} : memref<16x768xbf16, #tpu.memory_space<vmem>>, vector<16x128xbf16>,
    %c0_46 = arith.constant 0 : index
    %c10 = arith.constant 10 : index
    %91 = vector.load %arg1[%c0_46, %c10] : memref<16x12xf32, #tpu.memory_space<vmem>>, vector<16x1xf32>
    %c0_47 = arith.constant 0 : index
    %c11 = arith.constant 11 : index
    %92 = vector.load %arg1[%c0_47, %c11] : memref<16x12xf32, #tpu.memory_space<vmem>>, vector<16x1xf32>
    %93 = vector.shape_cast %91 : vector<16x1xf32> to vector<16x1xf32>
    %94 = vector.broadcast %93 : vector<16x1xf32> to vector<16x128xf32>
    %95 = vector.shape_cast %92 : vector<16x1xf32> to vector<16x1xf32>
    %96 = vector.broadcast %95 : vector<16x1xf32> to vector<16x128xf32>
    %97 = arith.select %2, %94, %96 : vector<16x128xi1>, vector<16x128xf32>
    %c1_48 = arith.constant 1 : index
    %c0_49 = arith.constant 0 : index
    %98 = vector.load %arg4[%c1_48, %c0_49] : memref<2x128xf32, #tpu.memory_space<vmem>>, vector<1x128xf32>
    %99 = vector.broadcast %98 : vector<1x128xf32> to vector<16x128xf32>
    %100 = arith.mulf %97, %99 : vector<16x128xf32>
    %c1_50 = arith.constant 1 : index
    %c0_51 = arith.constant 0 : index
    %101 = vector.load %arg5[%c1_50, %c0_51] : memref<2x128xf32, #tpu.memory_space<vmem>>, vector<1x128xf32>
    %102 = vector.broadcast %101 : vector<1x128xf32> to vector<16x128xf32>
    %103 = arith.addf %100, %102 : vector<16x128xf32>
    %104 = math.sin %103 : vector<16x128xf32>
    %105 = arith.truncf %104 : vector<16x128xf32> to vector<16x128xbf16>
    %c0_52 = arith.constant 0 : index
    %c640 = arith.constant 640 : index
    %106 = vector.load %arg9[%c0_52, %c640] : memref<16x768xbf16, #tpu.memory_space<vmem>>, vector<16x128xbf16>
    tpu.vector_store %arg9[%c0_52, %c640], %105 {strides = array<i32>} : memref<16x768xbf16, #tpu.memory_space<vmem>>, vector<16x128xbf16>,
    %c0_53 = arith.constant 0 : index
    %c0_54 = arith.constant 0 : index
    %107 = vector.load %arg9[%c0_53, %c0_54] : memref<16x768xbf16, #tpu.memory_space<vmem>>, vector<16x768xbf16>
    %c0_55 = arith.constant 0 : index
    %c0_56 = arith.constant 0 : index
    %108 = vector.load %arg6[%c0_55, %c0_56] : memref<768x128xbf16, #tpu.memory_space<vmem>>, vector<768x128xbf16>
    %cst = arith.constant dense<0.000000e+00> : vector<16x128xf32>
    %109 = tpu.matmul %107, %108, %cst {dimension_numbers = #tpu.dot_dimension_numbers<[1], [0], [0], [1], [0, 0, 1, 1], [], []>} : vector<16x768xbf16>, vector<768x128xbf16>, vector<16x128xf32> -> vector<16x128xf32>
    %c0_57 = arith.constant 0 : index
    %c0_58 = arith.constant 0 : index
    %110 = vector.load %arg7[%c0_57, %c0_58] : memref<1x128xf32, #tpu.memory_space<vmem>>, vector<1x128xf32>
    %111 = vector.broadcast %110 : vector<1x128xf32> to vector<16x128xf32>
    %112 = arith.addf %109, %111 : vector<16x128xf32>
    %c0_59 = arith.constant 0 : index
    %c0_60 = arith.constant 0 : index
    %113 = vector.load %arg8[%c0_59, %c0_60] : memref<16x128xf32, #tpu.memory_space<vmem>>, vector<16x128xf32>
    tpu.vector_store %arg8[%c0_59, %c0_60], %112 {strides = array<i32>} : memref<16x128xf32, #tpu.memory_space<vmem>>, vector<16x128xf32>,
    return
  }
  func.func @transform_0(%arg0: i32) -> (i32, i32) {
    %c0_i32 = arith.constant 0 : i32
    %c0_i32_0 = arith.constant 0 : i32
    return %arg0, %c0_i32 : i32, i32
  }
  func.func @transform_1(%arg0: i32) -> (i32, i32) {
    %c0_i32 = arith.constant 0 : i32
    %c0_i32_0 = arith.constant 0 : i32
    %c0_i32_1 = arith.constant 0 : i32
    return %c0_i32, %c0_i32_0 : i32, i32
  }
  func.func @transform_2(%arg0: i32) -> (i32, i32) {
    %c0_i32 = arith.constant 0 : i32
    %c0_i32_0 = arith.constant 0 : i32
    %c0_i32_1 = arith.constant 0 : i32
    return %c0_i32, %c0_i32_0 : i32, i32
  }
  func.func @transform_3(%arg0: i32) -> (i32, i32) {
    %c0_i32 = arith.constant 0 : i32
    %c0_i32_0 = arith.constant 0 : i32
    %c0_i32_1 = arith.constant 0 : i32
    return %c0_i32, %c0_i32_0 : i32, i32
  }
  func.func @transform_4(%arg0: i32) -> (i32, i32) {
    %c0_i32 = arith.constant 0 : i32
    %c0_i32_0 = arith.constant 0 : i32
    %c0_i32_1 = arith.constant 0 : i32
    return %c0_i32, %c0_i32_0 : i32, i32
  }
  func.func @transform_5(%arg0: i32) -> (i32, i32) {
    %c0_i32 = arith.constant 0 : i32
    %c0_i32_0 = arith.constant 0 : i32
    %c0_i32_1 = arith.constant 0 : i32
    return %c0_i32, %c0_i32_0 : i32, i32
  }
  func.func @transform_6(%arg0: i32) -> (i32, i32) {
    %c0_i32 = arith.constant 0 : i32
    %c0_i32_0 = arith.constant 0 : i32
    %c0_i32_1 = arith.constant 0 : i32
    return %c0_i32, %c0_i32_0 : i32, i32
  }
  func.func @transform_7(%arg0: i32) -> (i32, i32) {
    %c0_i32 = arith.constant 0 : i32
    %c0_i32_0 = arith.constant 0 : i32
    return %arg0, %c0_i32 : i32, i32
  }
}

</mosaic_0001>

<bundles_post_ra>
// kernel: tpu_custom_call.1
= control target key start
LH: loop header
LB: loop body
LE: loop exit
PB: predicated region body
PF: predicated region fallthrough
CT: control target
= control target key end

     0   :  { %12 = vsyncpa [#allocation4], 0  ;;  %s4014_s0 = inlined_call_operand.hbm [shape: f32[16,12], index: 0, kind: input, shape index: {}]   ;;  %s4015_s1 = inlined_call_operand.hbm [shape: f32[2,128], index: 1, kind: input, shape index: {}]   ;;  %s4016_s2 = inlined_call_operand.vmem [shape: f32[1,128], index: 2, kind: input, shape index: {}]   ;;  %s4017_s3 = inlined_call_operand.vmem [shape: f32[2,128], index: 3, kind: input, shape index: {}]   ;;  %s4018_s4 = inlined_call_operand.vmem [shape: f32[2,128], index: 4, kind: input, shape index: {}]   ;;  %s4019_s5 = inlined_call_operand.hbm [shape: bf16[768,128], index: 5, kind: input, shape index: {}]   ;;  %s4020_s6 = inlined_call_operand.vmem [shape: f32[1,128], index: 6, kind: input, shape index: {}]   ;;  %s4021_s7 = inlined_call_operand.hbm [shape: f32[16,128], index: 7, kind: output, shape index: {}]  }
   0x1   :  { %13 = vsyncpa [#allocation7], 0 }
   0x2   :  { %14 = vsyncpa [#allocation5], 0  ;;  %s2718_s24 = smov [#allocation6]   ;;  %s2719_s26 = smov [#allocation3]  }
   0x3   :  { %s33_s25 = sshll.u32 %s2718_s24, 4  ;;  %s20_s27 = sshll.u32 %s2719_s26, 4  ;;  %s34_s25 = int_to_ptr.vmem [resolvable:$true] %s33_s25  ;;  %s21_s27 = int_to_ptr.vmem [resolvable:$true] %s20_s27 }
   0x4   :  { %s2640_s28 = scalar_lea.vmem %s34_s25, 32  ;;  %p2645_p1 = scmp.lt.s32.totalorder %s34_s25, %s34_s25 }
   0x5   :  { %p2641_p0 = scmp.ne.s32.totalorder %s34_s25, %s2640_s28  ;;  %p2646_p2 = scmp.lt.s32.totalorder %s2640_s28, %s2640_s28 }
   0x7   :  { %p2647_p3 = por %p2646_p2, %p2645_p1 }
   0x9   :  { %p2648_p4 = pnand %p2647_p3, %p2641_p0 }
   0xb   :  { %2651 = shalt.err (!%p2648_p4)
}
   0xc   :  { %36 = dma.hbm_to_vmem [thread:$0]  %s4015_s1, 32, %s34_s25, [#allocation7]  }
   0xd   :  { %s2660_s8 = scalar_lea.vmem %s21_s27, 256  ;;  %p2665_p6 = scmp.lt.s32.totalorder %s21_s27, %s21_s27 }
   0xe   :  { %p2661_p5 = scmp.ne.s32.totalorder %s21_s27, %s2660_s8  ;;  %p2666_p7 = scmp.lt.s32.totalorder %s2660_s8, %s2660_s8 }
  0x10   :  { %p2667_p8 = por %p2666_p7, %p2665_p6 }
  0x12   :  { %p2668_p9 = pnand %p2667_p8, %p2661_p5 }
  0x14   :  { %2671 = shalt.err (!%p2668_p9)
}
  0x15   :  { %s2720_s9 = smov 128   ;;  %s2721_s10 = smov 8  }
  0x16   :  { %26 = dma.hbm_to_vmem [thread:$0]  %s4014_s0, 256, %s21_s27, [#allocation4], %s2720_s9, %s2720_s9, %s2721_s10  }
  0x17   :  { %s2722_s13 = smov [#allocation8]  }
  0x18   :  { %s48_s14 = sshll.u32 %s2722_s13, 4  ;;  %s49_s14 = int_to_ptr.vmem [resolvable:$true] %s48_s14 }
  0x19   :  { %s2680_s1 = scalar_lea.vmem %s49_s14, 6144  ;;  %p2685_p11 = scmp.lt.s32.totalorder %s49_s14, %s49_s14 }
  0x1a   :  { %p2681_p10 = scmp.ne.s32.totalorder %s49_s14, %s2680_s1  ;;  %p2686_p12 = scmp.lt.s32.totalorder %s2680_s1, %s2680_s1 }
  0x1c   :  { %p2687_p13 = por %p2686_p12, %p2685_p11 }
  0x1e   :  { %p2688_p0 = pnand %p2687_p13, %p2681_p10 }
  0x20   :  { %2691 = shalt.err (!%p2688_p0)
}
  0x21   :  { %s2723_s15 = smov 64   ;;  %s2724_s16 = smov 4  }
  0x22   :  { %54 = dma.hbm_to_vmem [thread:$0]  %s4019_s5, 6144, %s49_s14, [#allocation7], %s2723_s15, %s2723_s15, %s2724_s16  }
  0x23   :  { %2712 = dma.done.wait [#allocation4], 256  }
  0x24   :  { %2713 = vsyncadd [#allocation4], 4294967040 }
  0x25   :  { %2714 = dma.done.wait [#allocation7], 6176  }
  0x26   :  { %2715 = vsyncadd [#allocation7], 4294961120  ;;  %v2725_v0 = vmov 1   ;;  %v2726_v1 = vmov 0   ;;  %v70_v2 = vld [vmem:[#allocation3] sm:$0xff]  ;;  %v71_v3 = vld [vmem:[#allocation3 + $0x8] sm:$0xff]  ;;  %v67_v29 = vlaneseq }
  0x27   :  { %2507 = vset.pattern.permute.xlu1 %v2725_v0  ;;  %2506 = vset.pattern.permute.xlu0 %v2726_v1  ;;  %v2727_v4 = vmov 2   ;;  %v2728_v5 = vmov 3   ;;  %v2729_v6 = vmov 6   ;;  %v2730_v7 = vmov 7   ;;  %s2736_s0 = smov 94   ;;  %s2737_s5 = smov 88  }
  0x28   :  { %91 = vperm.xlu1 %2507, %v70_v2   ;;  %75 = vperm.xlu0 %2506, %v70_v2   ;;  %v2731_v8 = vmov 4   ;;  %v2732_v9 = vmov 8   ;;  %v2733_v10 = vmov 9   ;;  %v2734_v11 = vmov 5   ;;  %v2798_v16 = vld [vmem:[#allocation6 + $0x1] ss:$0 sm:$0xff] }
  0x29   :  { %v2735_v12 = vmov 11   ;;  %v2351_v13 = vpack.c.bf16 %v71_v3, %v71_v3  ;;  %v2738_v14 = vmov 10   ;;  %v2350_v15 = vpack.c.bf16 %v70_v2, %v70_v2  ;;  %v2800_v17 = vld [vmem:[#allocation6] ss:$0 sm:$0xff]  ;;  %s2745_s1 = smov [#allocation9]  }
  0x2a   :  { %v2807_v22 = vld [vmem:[%s4016_s2] ss:$0 sm:$0xff]  ;;  %v2819_v37 = vand.u32 127, %v67_v29  ;;  %v2739_v58 = vmov 683565275   ;;  %s2202_s15 = sshll.u32 %s2745_s1, 4  ;;  %s2203_s15 = int_to_ptr.vmem [resolvable:$true] %s2202_s15 }
  0x2b   :  { %v2230_v50 = vld [vmem:[%s4017_s3] ss:$0 sm:$0xff]  ;;  %v2740_v62 = vmov 2475754826   ;;  %v4031_v0 = vmov 2131351028   ;;  %p2697_p2 = scmp.lt.s32.totalorder %s2203_s15, %s2203_s15 }
  0x2c   :  { %95 = vperm.xlu1 %2507, %v71_v3   ;;  %80 = vperm.xlu0 %2506, %v71_v3   ;;  %vm69_vm0 = vcmp.lt.s32.totalorder %v2819_v37, 64 }
  0x30   :  { %2509 = vset.pattern.permute.xlu1 %v2727_v4  ;;  %2508 = vset.pattern.permute.xlu0 %v2727_v4  ;;  %v2743_v4 = vmov 920167782  }
  0x31   :  { %359 = vperm.xlu1 %2509, %v71_v3   ;;  %354 = vperm.xlu0 %2508, %v70_v2  }
  0x35   :  { %2510 = vset.pattern.permute.xlu1 %v2728_v5  ;;  %2511 = vset.pattern.permute.xlu0 %v2728_v5 }
  0x36   :  { %363 = vperm.xlu1 %2510, %v70_v2   ;;  %367 = vperm.xlu0 %2511, %v71_v3  }
  0x3a   :  { %2512 = vset.pattern.permute.xlu1 %v2729_v6  ;;  %2513 = vset.pattern.permute.xlu0 %v2730_v7 }
  0x3b   :  { %863 = vperm.xlu1 %2512, %v70_v2   ;;  %879 = vperm.xlu0 %2513, %v70_v2  }
  0x3f   :  { %868 = vperm.xlu1 %2512, %v71_v3   ;;  %2516 = vset.pattern.permute.xlu0 %v2731_v8 }
  0x40   :  { %613 = vperm.xlu0 %2516, %v71_v3  }
  0x43   :  { %2514 = vset.pattern.permute.xlu1 %v2730_v7 }
  0x44   :  { %883 = vperm.xlu1 %2514, %v71_v3   ;;  %2518 = vset.pattern.permute.xlu0 %v2732_v9 }
  0x45   :  { %1141 = vperm.xlu0 %2518, %v70_v2  }
  0x48   :  { %2515 = vset.pattern.permute.xlu1 %v2731_v8 }
  0x49   :  { %608 = vperm.xlu1 %2515, %v70_v2   ;;  %2521 = vset.pattern.permute.xlu0 %v2733_v10 }
  0x4a   :  { %1154 = vperm.xlu0 %2521, %v71_v3  }
  0x4d   :  { %2517 = vset.pattern.permute.xlu1 %v2734_v11  ;;  %v2744_v11 = vmov 1326507024  }
  0x4e   :  { %617 = vperm.xlu1 %2517, %v70_v2   ;;  %2523 = vset.pattern.permute.xlu0 %v2735_v12 }
  0x4f   :  { %1404 = vperm.xlu0 %2523, %v70_v2  }
  0x52   :  { %621 = vperm.xlu1 %2517, %v71_v3  }
  0x53   :  { %343 = vrot.lane.b32.xlu0 %v2351_v13, %s2736_s0 }
  0x56   :  { %2519 = vset.pattern.permute.xlu1 %v2732_v9 }
  0x57   :  { %1146 = vperm.xlu1 %2519, %v71_v3   ;;  %1131 = vrot.lane.b32.xlu0 %v2351_v13, %s2737_s5 }
  0x5b   :  { %2520 = vset.pattern.permute.xlu1 %v2733_v10 }
  0x5c   :  { %1150 = vperm.xlu1 %2520, %v70_v2  }
  0x60   :  { %2522 = vset.pattern.permute.xlu1 %v2738_v14 }
  0x61   :  { %1395 = vperm.xlu1 %2522, %v70_v2   ;;  %v4029_v2 = vmov 2102212464  }
  0x65   :  { %1400 = vperm.xlu1 %2522, %v71_v3  }
  0x69   :  { %2524 = vset.pattern.permute.xlu1 %v2735_v12 }
  0x6a   :  { %1408 = vperm.xlu1 %2524, %v71_v3  }
  0x6e   :  { %341 = vrot.lane.b32.xlu1 %v2350_v15, %s2736_s0 }
  0x72   :  { %1129 = vrot.lane.b32.xlu1 %v2350_v15, %s2737_s5 }
  0xa3   :  { %v92_v18 = vpop.permute.xlu1 %91  ;;  %v76_v19 = vpop.permute.xlu0 %75 }
  0xa4   :  { %v102_v20 = vmul.f32 %v2798_v16, %v92_v18  ;;  %v87_v21 = vmul.f32 %v2800_v17, %v76_v19 }
  0xa6   :  { %v104_v23 = vadd.f32 %v102_v20, %v87_v21 }
  0xa7   :  { %v96_v24 = vpop.permute.xlu1 %95  ;;  %v81_v25 = vpop.permute.xlu0 %80 }
  0xa8   :  { %v2810_v26 = vadd.f32 %v2807_v22, %v104_v23  ;;  %v103_v27 = vmul.f32 %v2798_v16, %v96_v24  ;;  %v88_v28 = vmul.f32 %v2800_v17, %v81_v25 }
  0xaa   :  { %v115_v30 = vand.u32 2147483647, %v2810_v26  ;;  %v118_v31 = vand.u32 2139095040, %v2810_v26  ;;  %v105_v32 = vadd.f32 %v103_v27, %v88_v28 }
  0xac   :  { %v119_v33 = vshrl.u32 %v118_v31, 23  ;;  %v2817_v34 = vadd.f32 %v2807_v22, %v105_v32  ;;  %v360_v35 = vpop.permute.xlu1 %359  ;;  %v355_v36 = vpop.permute.xlu0 %354  ;;  %v122_v38 = vand.u32 8388607, %v115_v30 }
  0xae   :  { %v2218_v39 = vadd.s32 4294967169, %v119_v33  ;;  %v4024_v40 = vand.u32 2147483647, %v2817_v34  ;;  %v222_v41 = vand.u32 2139095040, %v2817_v34  ;;  %v123_v43 = vor.u32 8388608, %v122_v38 }
  0xb0   :  { %v125_v42 = vadd.s32 1, %v2218_v39  ;;  %v223_v44 = vshrl.u32 %v222_v41, 23  ;;  %v226_v45 = vand.u32 8388607, %v4024_v40  ;;  %v2833_v54 = vshll.u32 %v123_v43, 8 }
  0xb1   :  { %v364_v46 = vpop.permute.xlu1 %363  ;;  %v368_v47 = vpop.permute.xlu0 %367 }
  0xb2   :  { %vm126_vm1 = vcmp.gt.s32.totalorder %v125_v42, 0  ;;  %v2222_v49 = vadd.s32 4294967169, %v223_v44  ;;  %v370_v51 = vsel %vm69_vm0, %v355_v36, %v364_v46  ;;  %v227_v55 = vor.u32 8388608, %v226_v45  ;;  %v2231_v36 = vld [vmem:[%s4018_s4] ss:$0 sm:$0xff] }
  0xb3   :  { %v127_v48 = vsel %vm126_vm1, %v125_v42, 0  ;;  %v371_v56 = vsel %vm69_vm0, %v360_v35, %v368_v47  ;;  %v377_v61 = vmul.f32 %v2230_v50, %v370_v51 }
  0xb4   :  { %v128_v52 = vshrl.u32 %v127_v48, 5  ;;  %v129_v53 = vand.u32 31, %v127_v48  ;;  %v229_v60 = vadd.s32 1, %v2222_v49  ;;  %v378_v31 = vmul.f32 %v2230_v50, %v371_v56 }
  0xb5   :  { %v2857_v42 = vshll.u32 %v227_v55, 8  ;;  %v2868_v49 = vadd.f32 %v2231_v36, %v377_v61 }
  0xb6   :  { %v130_v57 = vsub.s32 32, %v129_v53  ;;  %v132_v59 = vshll.u32 %v2739_v58, %v129_v53  ;;  %v135_v63 = vshll.u32 %v2740_v62, %v129_v53  ;;  %v138_v1 = vshll.u32 %v4031_v0, %v129_v53 }
  0xb7   :  { %v141_v3 = vshll.u32 %v4029_v2, %v129_v53  ;;  %v144_v5 = vshll.u32 %v2743_v4, %v129_v53  ;;  %vm147_vm2 = vcmp.lt.s32.totalorder %v128_v52, 1  ;;  %vm149_vm3 = vcmp.lt.s32.totalorder %v128_v52, 3 }
  0xb8   :  { %v133_v6 = vshrl.u32 %v2740_v62, %v130_v57  ;;  %v136_v7 = vshrl.u32 %v4031_v0, %v130_v57  ;;  %v139_v8 = vshrl.u32 %v4029_v2, %v130_v57  ;;  %v131_v9 = vshrl.u32 %v2739_v58, %v130_v57 }
  0xb9   :  { %v142_v10 = vshrl.u32 %v2743_v4, %v130_v57  ;;  %v145_v12 = vshrl.u32 %v2744_v11, %v130_v57  ;;  %vm230_vm4 = vcmp.gt.s32.totalorder %v229_v60, 0  ;;  %vm150_vm5 = vcmp.lt.s32.totalorder %v128_v52, 4 }
  0xba   :  { %v134_v13 = vor.u32 %v133_v6, %v132_v59  ;;  %v137_v14 = vor.u32 %v136_v7, %v135_v63  ;;  %v140_v15 = vor.u32 %v139_v8, %v138_v1  ;;  %v231_v20 = vsel %vm230_vm4, %v229_v60, 0  ;;  %v2886_v7 = vpop.permute.xlu1 %863 }
  0xbb   :  { %v143_v18 = vor.u32 %v142_v10, %v141_v3  ;;  %v146_v19 = vor.u32 %v145_v12, %v144_v5  ;;  %vm148_vm6 = vcmp.lt.s32.totalorder %v128_v52, 2  ;;  %v233_v35 = vand.u32 31, %v231_v20 }
  0xbc   :  { %v151_v21 = vsel %vm147_vm2, %v131_v9, %v134_v13  ;;  %v152_v23 = vsel %vm150_vm5, %v140_v15, 2102212464  ;;  %v155_v24 = vsel %vm147_vm2, %v134_v13, %v137_v14  ;;  %v159_v25 = vsel %vm147_vm2, %v137_v14, %v140_v15 }
  0xbd   :  { %v153_v27 = vsel %vm149_vm3, %v137_v14, %v152_v23  ;;  %v156_v28 = vsel %vm150_vm5, %v143_v18, 920167782  ;;  %v160_v29 = vsel %vm150_vm5, %v146_v19, 1326507024  ;;  %v232_v47 = vshrl.u32 %v231_v20, 5 }
  0xbe   :  { %v157_v32 = vsel %vm149_vm3, %v140_v15, %v156_v28  ;;  %v161_v33 = vsel %vm149_vm3, %v143_v18, %v160_v29  ;;  %v154_v38 = vsel %vm148_vm6, %v151_v21, %v153_v27  ;;  %v234_v48 = vsub.s32 32, %v233_v35 }
  0xbf   :  { %v158_v39 = vsel %vm148_vm6, %v155_v24, %v157_v32  ;;  %v162_v41 = vsel %vm148_vm6, %v159_v25, %v161_v33  ;;  %v2870_v50 = vadd.f32 %v2231_v36, %v378_v31  ;;  %v170_v51 = vmul.u32 %v2833_v54, %v154_v38 }
  0xc0   :  { %v2860_v43 = vmul.u32.u64.low %v2833_v54, %v162_v41  ;;  %v2861_v44 = vmul.u32.u64.high %v2833_v54, %v162_v41, %v2860_v43  ;;  %v2864_v45 = vmul.u32.u64.low %v2833_v54, %v158_v39  ;;  %v2865_v46 = vmul.u32.u64.high %v2833_v54, %v158_v39, %v2864_v45 }
  0xc1   :  { %v236_v52 = vshll.u32 %v2739_v58, %v233_v35  ;;  %v239_v53 = vshll.u32 %v2740_v62, %v233_v35  ;;  %v242_v55 = vshll.u32 %v4031_v0, %v233_v35  ;;  %v237_v56 = vshrl.u32 %v2740_v62, %v234_v48 }
  0xc2   :  { %v240_v57 = vshrl.u32 %v4031_v0, %v234_v48  ;;  %v243_v59 = vshrl.u32 %v4029_v2, %v234_v48  ;;  %v245_v60 = vshll.u32 %v4029_v2, %v233_v35  ;;  %vm172_vm7 = vc.u32 %v2861_v44, %v2864_v45 }
  0xc3   :  { %v173_v61 = vadd.s32 1, %v2865_v46  ;;  %v246_v54 = vshrl.u32 %v2743_v4, %v234_v48  ;;  %v248_v63 = vshll.u32 %v2743_v4, %v233_v35  ;;  %v238_v1 = vor.u32 %v237_v56, %v236_v52  ;;  %v869_v35 = vpop.permute.xlu1 %868 }
  0xc4   :  { %v241_v3 = vor.u32 %v240_v57, %v239_v53  ;;  %v244_v5 = vor.u32 %v243_v59, %v242_v55  ;;  %v249_v6 = vshrl.u32 %v2744_v11, %v234_v48  ;;  %vm251_vm8 = vcmp.lt.s32.totalorder %v232_v47, 1 }
  0xc5   :  { %v174_v8 = vsel %vm172_vm7, %v173_v61, %v2865_v46  ;;  %v247_v9 = vor.u32 %v246_v54, %v245_v60  ;;  %vm254_vm9 = vcmp.lt.s32.totalorder %v232_v47, 4  ;;  %vm253_vm10 = vcmp.lt.s32.totalorder %v232_v47, 3 }
  0xc6   :  { %v175_v10 = vadd.s32 %v174_v8, %v170_v51  ;;  %v250_v12 = vor.u32 %v249_v6, %v248_v63  ;;  %v256_v13 = vsel %vm254_vm9, %v244_v5, 2102212464  ;;  %v235_v14 = vshrl.u32 %v2739_v58, %v234_v48 }
  0xc7   :  { %v259_v15 = vsel %vm251_vm8, %v238_v1, %v241_v3  ;;  %v260_v18 = vsel %vm254_vm9, %v247_v9, 920167782  ;;  %v263_v19 = vsel %vm251_vm8, %v241_v3, %v244_v5  ;;  %vm252_vm11 = vcmp.lt.s32.totalorder %v232_v47, 2  ;;  %v884_v56 = vpop.permute.xlu1 %883 }
  0xc8   :  { %v176_v20 = vadd.s32 536870912, %v175_v10  ;;  %v261_v21 = vsel %vm253_vm10, %v244_v5, %v260_v18  ;;  %v264_v23 = vsel %vm254_vm9, %v250_v12, 1326507024  ;;  %v255_v24 = vsel %vm251_vm8, %v235_v14, %v238_v1 }
  0xc9   :  { %v257_v25 = vsel %vm253_vm10, %v241_v3, %v256_v13  ;;  %v262_v27 = vsel %vm252_vm11, %v259_v15, %v261_v21  ;;  %v265_v28 = vsel %vm253_vm10, %v247_v9, %v264_v23  ;;  %v389_v39 = vand.u32 2139095040, %v2868_v49 }
  0xca   :  { %v2890_v29 = vshrl.u32 %v176_v20, 30  ;;  %v266_v31 = vsel %vm252_vm11, %v263_v19, %v265_v28  ;;  %v2893_v32 = vmul.u32.u64.low %v2857_v42, %v262_v27  ;;  %v2894_v33 = vmul.u32.u64.high %v2857_v42, %v262_v27, %v2893_v32 }
  0xcb   :  { %v2898_v36 = vmul.u32.u64.low %v2857_v42, %v266_v31  ;;  %v2899_v38 = vmul.u32.u64.high %v2857_v42, %v266_v31, %v2898_v36  ;;  %v258_v43 = vsel %vm252_vm11, %v255_v24, %v257_v25  ;;  %v390_v46 = vshrl.u32 %v389_v39, 23 }
  0xcc   :  { %v178_v41 = vshll.u32 %v2890_v29, 30  ;;  %v493_v47 = vand.u32 2139095040, %v2870_v50  ;;  %v277_v51 = vadd.s32 1, %v2894_v33  ;;  %v274_v52 = vmul.u32 %v2857_v42, %v258_v43 }
  0xcd   :  { %vm276_vm12 = vc.u32 %v2899_v38, %v2893_v32  ;;  %v2232_v53 = vadd.s32 4294967169, %v390_v46  ;;  %v891_v63 = vmul.f32 %v2798_v16, %v884_v56  ;;  %v386_v1 = vand.u32 2147483647, %v2868_v49 }
  0xce   :  { %v2904_v48 = vsub.s32 %v175_v10, %v178_v41  ;;  %v278_v55 = vsel %vm276_vm12, %v277_v51, %v2894_v33  ;;  %v494_v61 = vshrl.u32 %v493_v47, 23  ;;  %v876_v42 = vmul.f32 %v2800_v17, %v869_v35 }
  0xcf   :  { %v279_v59 = vadd.s32 %v278_v55, %v274_v52  ;;  %v396_v60 = vadd.s32 1, %v2232_v53  ;;  %v393_v14 = vand.u32 8388607, %v386_v1  ;;  %v490_v15 = vand.u32 2147483647, %v2870_v50 }
  0xd0   :  { %v181_v57 = vsub.s32 0, %v2904_v48  ;;  %v2236_v9 = vadd.s32 4294967169, %v494_v61  ;;  %v2918_v10 = vadd.f32 %v891_v63, %v876_v42  ;;  %v609_v61 = vpop.permute.xlu1 %608  ;;  %vm388_vm7 = vcmp.lt.s32.totalorder %v2868_v49, 0 }
  0xd1   :  { %v280_v54 = vadd.s32 536870912, %v279_v59  ;;  %vm397_vm13 = vcmp.gt.s32.totalorder %v396_v60, 0  ;;  %v394_v55 = vor.u32 8388608, %v393_v14  ;;  %vm3050_vm12 = vcmp.le.f32.partialorder %v386_v1, 0.7853982 }
  0xd2   :  { %v398_v3 = vsel %vm397_vm13, %v396_v60, 0  ;;  %v2219_v5 = vmin.u32 %v181_v57, %v2904_v48  ;;  %v500_v21 = vadd.s32 1, %v2236_v9 }
  0xd3   :  { %v2916_v6 = vshrl.u32 %v280_v54, 30  ;;  %v400_v8 = vand.u32 31, %v398_v3  ;;  %v399_v36 = vshrl.u32 %v398_v3, 5  ;;  %v434_v9 = vshll.u32 %v394_v55, 8 }
  0xd4   :  { %v183_v18 = vclz %v2219_v5  ;;  %vm501_vm14 = vcmp.gt.s32.totalorder %v500_v21, 0 }
  0xd5   :  { %v282_v12 = vshll.u32 %v2916_v6, 30  ;;  %v401_v13 = vsub.s32 32, %v400_v8  ;;  %v403_v23 = vshll.u32 %v2739_v58, %v400_v8  ;;  %v406_v24 = vshll.u32 %v2740_v62, %v400_v8 }
  0xd6   :  { %v409_v27 = vshll.u32 %v4031_v0, %v400_v8  ;;  %v412_v33 = vshll.u32 %v4029_v2, %v400_v8  ;;  %v415_v41 = vshll.u32 %v2743_v4, %v400_v8  ;;  %v2220_v53 = vadd.s32 4294967294, %v183_v18 }
  0xd7   :  { %v2924_v19 = vsub.s32 %v279_v59, %v282_v12  ;;  %v404_v20 = vshrl.u32 %v2740_v62, %v401_v13  ;;  %v407_v25 = vshrl.u32 %v4031_v0, %v401_v13  ;;  %v410_v31 = vshrl.u32 %v4029_v2, %v401_v13  ;;  %v880_v12 = vpop.permute.xlu0 %879 }
  0xd8   :  { %v413_v35 = vshrl.u32 %v2743_v4, %v401_v13  ;;  %v416_v43 = vshrl.u32 %v2744_v11, %v401_v13  ;;  %v497_v59 = vand.u32 8388607, %v490_v15  ;;  %v402_v60 = vshrl.u32 %v2739_v58, %v401_v13 }
  0xd9   :  { %v285_v28 = vsub.s32 0, %v2924_v19  ;;  %v405_v39 = vor.u32 %v404_v20, %v403_v23  ;;  %v408_v47 = vor.u32 %v407_v25, %v406_v24  ;;  %v411_v51 = vor.u32 %v410_v31, %v409_v27 }
  0xda   :  { %v414_v52 = vor.u32 %v413_v35, %v412_v33  ;;  %v417_v56 = vor.u32 %v416_v43, %v415_v41  ;;  %vm418_vm15 = vcmp.lt.s32.totalorder %v399_v36, 1  ;;  %vm420_vm1 = vcmp.lt.s32.totalorder %v399_v36, 3  ;;  %v618_v43 = vpop.permute.xlu1 %617 }
  0xdb   :  { %v2223_v46 = vmin.u32 %v285_v28, %v2924_v19  ;;  %vm421_vm2 = vcmp.lt.s32.totalorder %v399_v36, 4  ;;  %v426_v63 = vsel %vm418_vm15, %v405_v39, %v408_v47  ;;  %v430_v42 = vsel %vm418_vm15, %v408_v47, %v411_v51 }
  0xdc   :  { %v423_v54 = vsel %vm421_vm2, %v411_v51, 2102212464  ;;  %v427_v3 = vsel %vm421_vm2, %v414_v52, 920167782  ;;  %vm2221_vm3 = vcmp.lt.s32.totalorder %v2220_v53, 0  ;;  %vm419_vm4 = vcmp.lt.s32.totalorder %v399_v36, 2 }
  0xdd   :  { %v287_v57 = vclz %v2223_v46  ;;  %v428_v5 = vsel %vm420_vm1, %v411_v51, %v427_v3  ;;  %v431_v8 = vsel %vm421_vm2, %v417_v56, 1326507024  ;;  %v422_v18 = vsel %vm418_vm15, %v402_v60, %v405_v39 }
  0xde   :  { %v432_v20 = vsel %vm420_vm1, %v414_v52, %v431_v8  ;;  %v424_v13 = vsel %vm420_vm1, %v408_v47, %v423_v54  ;;  %v429_v23 = vsel %vm419_vm4, %v426_v63, %v428_v5  ;;  %v502_v25 = vsel %vm501_vm14, %v500_v21, 0 }
  0xdf   :  { %v2224_v14 = vadd.s32 4294967294, %v287_v57  ;;  %v433_v24 = vsel %vm419_vm4, %v430_v42, %v432_v20  ;;  %v498_v27 = vor.u32 8388608, %v497_v59  ;;  %v875_v28 = vmul.f32 %v2800_v17, %v2886_v7 }
  0xe0   :  { %v890_v31 = vmul.f32 %v2798_v16, %v880_v12  ;;  %v2948_v33 = vmul.u32.u64.low %v434_v9, %v433_v24  ;;  %v2949_v35 = vmul.u32.u64.high %v434_v9, %v433_v24, %v2948_v33  ;;  %v504_v41 = vand.u32 31, %v502_v25 }
  0xe1   :  { %v2952_v39 = vsel %vm2221_vm3, 0, %v2220_v53  ;;  %v425_v36 = vsel %vm419_vm4, %v422_v18, %v424_v13  ;;  %v2954_v46 = vmul.u32.u64.low %v434_v9, %v429_v23  ;;  %v2955_v47 = vmul.u32.u64.high %v434_v9, %v429_v23, %v2954_v46 }
  0xe2   :  { %v171_v21 = vadd.s32 %v2864_v45, %v2861_v44  ;;  %vm2225_vm5 = vcmp.lt.s32.totalorder %v2224_v14, 0  ;;  %v505_v17 = vsub.s32 32, %v504_v41  ;;  %v275_v16 = vadd.s32 %v2893_v32, %v2899_v38 }
  0xe3   :  { %v2962_v7 = vshll.u32 %v498_v27, 8  ;;  %v892_v51 = vadd.f32 %v890_v31, %v875_v28  ;;  %v2966_v52 = vsel %vm69_vm0, %v609_v61, %v618_v43  ;;  %v187_v53 = vsub.s32 32, %v2952_v39 }
  0xe4   :  { %v191_v55 = vsub.s32 4294967266, %v2952_v39  ;;  %v441_v56 = vmul.u32 %v434_v9, %v425_v36  ;;  %vm443_vm6 = vc.u32 %v2949_v35, %v2954_v46  ;;  %v2972_v44 = vsel %vm2225_vm5, 0, %v2224_v14 }
  0xe5   :  { %v444_v45 = vadd.s32 1, %v2955_v47  ;;  %v2975_v32 = vshrl.u32 %v502_v25, 5  ;;  %v507_v38 = vshll.u32 %v2739_v58, %v504_v41  ;;  %v508_v57 = vshrl.u32 %v2740_v62, %v505_v17 }
  0xe6   :  { %v510_v59 = vshll.u32 %v2740_v62, %v504_v41  ;;  %v511_v60 = vshrl.u32 %v4031_v0, %v505_v17  ;;  %v514_v61 = vshrl.u32 %v4029_v2, %v505_v17  ;;  %v513_v63 = vshll.u32 %v4031_v0, %v504_v41 }
  0xe7   :  { %v445_v54 = vsel %vm443_vm6, %v444_v45, %v2955_v47  ;;  %v516_v3 = vshll.u32 %v4029_v2, %v504_v41  ;;  %v517_v42 = vshrl.u32 %v2743_v4, %v505_v17  ;;  %v295_v5 = vsub.s32 4294967266, %v2972_v44 }
  0xe8   :  { %v446_v8 = vadd.s32 %v445_v54, %v441_v56  ;;  %v509_v9 = vor.u32 %v508_v57, %v507_v38  ;;  %v512_v12 = vor.u32 %v511_v60, %v510_v59  ;;  %v515_v14 = vor.u32 %v514_v61, %v513_v63 }
  0xe9   :  { %v518_v18 = vor.u32 %v517_v42, %v516_v3  ;;  %v519_v20 = vshll.u32 %v2743_v4, %v504_v41  ;;  %v520_v13 = vshrl.u32 %v2744_v11, %v505_v17  ;;  %v189_v23 = vshrl.u32 %v171_v21, %v187_v53 }
  0xea   :  { %v192_v24 = vadd.s32 127, %v191_v55  ;;  %v447_v25 = vadd.s32 536870912, %v446_v8  ;;  %v2991_v27 = vadd.f32 %v2807_v22, %v892_v51  ;;  %v291_v28 = vsub.s32 32, %v2972_v44 }
  0xeb   :  { %v521_v31 = vor.u32 %v520_v13, %v519_v20  ;;  %vm522_vm8 = vcmp.lt.s32.totalorder %v2975_v32, 1  ;;  %vm525_vm9 = vcmp.lt.s32.totalorder %v2975_v32, 4  ;;  %vm524_vm10 = vcmp.lt.s32.totalorder %v2975_v32, 3 }
  0xec   :  { %v448_v33 = vshrl.u32 %v447_v25, 30  ;;  %v530_v41 = vsel %vm522_vm8, %v509_v9, %v512_v12  ;;  %v531_v43 = vsel %vm525_vm9, %v518_v18, 920167782  ;;  %v296_v36 = vadd.s32 127, %v295_v5 }
  0xed   :  { %v506_v47 = vshrl.u32 %v2739_v58, %v505_v17  ;;  %vm523_vm11 = vcmp.lt.s32.totalorder %v2975_v32, 2  ;;  %v532_v21 = vsel %vm524_vm10, %v515_v14, %v531_v43  ;;  %v527_v53 = vsel %vm525_vm9, %v515_v14, 2102212464 }
  0xee   :  { %v449_v51 = vshll.u32 %v448_v33, 30  ;;  %v533_v55 = vsel %vm523_vm11, %v530_v41, %v532_v21  ;;  %v534_v56 = vsel %vm522_vm8, %v512_v12, %v515_v14  ;;  %v472_v45 = vsub.s32 4, %v448_v33 }
  0xef   :  { %v535_v38 = vsel %vm525_vm9, %v521_v31, 1326507024  ;;  %v3008_v57 = vmul.u32.u64.low %v2962_v7, %v533_v55  ;;  %v3009_v59 = vmul.u32.u64.high %v2962_v7, %v533_v55, %v3008_v57  ;;  %v188_v17 = vshll.u32 %v2904_v48, %v2952_v39 }
  0xf0   :  { %v193_v60 = vshll.u32 %v192_v24, 23  ;;  %v3014_v61 = vsub.s32 %v446_v8, %v449_v51  ;;  %v536_v54 = vsel %vm524_vm10, %v518_v18, %v535_v38  ;;  %v293_v63 = vshrl.u32 %v275_v16, %v291_v28  ;;  %v3032_v16 = vld [vmem:[%s4017_s3 + $0x1] ss:$0 sm:$0xff] }
  0xf1   :  { %v526_v3 = vsel %vm522_vm8, %v506_v47, %v509_v9  ;;  %v528_v42 = vsel %vm524_vm10, %v512_v12, %v527_v53  ;;  %v537_v5 = vsel %vm523_vm11, %v534_v56, %v536_v54  ;;  %v297_v14 = vshll.u32 %v296_v36, 23 }
  0xf2   :  { %v452_v20 = vsub.s32 0, %v3014_v61  ;;  %v3026_v48 = vmul.u32.u64.low %v2962_v7, %v537_v5  ;;  %v3027_v39 = vmul.u32.u64.high %v2962_v7, %v537_v5, %v3026_v48  ;;  %v3034_v8 = vor.u32 %v189_v23, %v188_v17 }
  0xf3   :  { %v473_v9 = vsel %vm388_vm7, %v472_v45, %v448_v33  ;;  %v4023_v12 = vand.u32 2147483647, %v2991_v27  ;;  %v906_v18 = vand.u32 2139095040, %v2991_v27  ;;  %v292_v13 = vshll.u32 %v2924_v19, %v2972_v44 }
  0xf4   :  { %v2233_v24 = vmin.u32 %v452_v20, %v3014_v61  ;;  %v529_v25 = vsel %vm523_vm11, %v526_v3, %v528_v42  ;;  %v548_v28 = vadd.s32 1, %v3009_v59  ;;  %v3046_v31 = vor.u32 4788187, %v193_v60 }
  0xf5   :  { %v907_v33 = vshrl.u32 %v906_v18, 23  ;;  %v631_v41 = vmul.f32 %v3032_v16, %v2966_v52  ;;  %v3056_v19 = vor.u32 %v293_v63, %v292_v13  ;;  %v3058_v44 = vor.u32 4788187, %v297_v14 }
  0xf6   :  { %v454_v32 = vclz %v2233_v24  ;;  %v475_v43 = vsel %vm3050_vm12, 0, %v473_v9  ;;  %v545_v36 = vmul.u32 %v2962_v7, %v529_v25  ;;  %vm547_vm13 = vc.u32 %v3027_v39, %v3008_v57 }
  0xf7   :  { %v2257_v1 = vadd.s32 4294967169, %v907_v33  ;;  %v910_v47 = vand.u32 8388607, %v4023_v12  ;;  %v197_v21 = vcvt.s32.f32 %v3034_v8  ;;  %v549_v51 = vsel %vm547_vm13, %v548_v28, %v3009_v59 }
  0xf8   :  { %v2234_v52 = vadd.s32 4294967294, %v454_v32  ;;  %v3071_v53 = vadd.f32 %v2807_v22, %v2918_v10  ;;  %v195_v55 = vand.u32 2147483647, %v3046_v31  ;;  %v479_v56 = vadd.s32 3, %v475_v43  ;;  %v3082_v22 = vld [vmem:[%s4018_s4 + $0x1] ss:$0 sm:$0xff] }
  0xf9   :  { %v550_v7 = vadd.s32 %v549_v51, %v545_v36  ;;  %v913_v45 = vadd.s32 1, %v2257_v1  ;;  %v299_v38 = vand.u32 2147483647, %v3058_v44  ;;  %v301_v17 = vcvt.s32.f32 %v3056_v19 }
  0xfa   :  { %v442_v60 = vadd.s32 %v2954_v46, %v2949_v35  ;;  %vm2235_vm14 = vcmp.lt.s32.totalorder %v2234_v52, 0  ;;  %vm492_vm15 = vcmp.lt.s32.totalorder %v2870_v50, 0  ;;  %v911_v63 = vor.u32 8388608, %v910_v47 }
  0xfb   :  { %v457_v59 = vsel %vm2235_vm14, 0, %v2234_v52  ;;  %v551_v54 = vadd.s32 536870912, %v550_v7  ;;  %vm914_vm1 = vcmp.gt.s32.totalorder %v913_v45, 0  ;;  %v4022_v5 = vand.u32 2147483647, %v3071_v53 }
  0xfc   :  { %v458_v10 = vsub.s32 32, %v457_v59  ;;  %v462_v3 = vsub.s32 4294967266, %v457_v59  ;;  %v915_v42 = vsel %vm914_vm1, %v913_v45, 0  ;;  %v3085_v14 = vand.u32 3, %v479_v56 }
  0xfd   :  { %v552_v35 = vshrl.u32 %v551_v54, 30  ;;  %v917_v46 = vand.u32 31, %v915_v42  ;;  %v1010_v20 = vand.u32 2139095040, %v3071_v53  ;;  %v459_v48 = vshll.u32 %v3014_v61, %v457_v59 }
  0xfe   :  { %v460_v9 = vshrl.u32 %v442_v60, %v458_v10  ;;  %v463_v18 = vadd.s32 127, %v462_v3  ;;  %v3090_v13 = vadd.f32 %v3082_v22, %v631_v41  ;;  %vm3094_vm2 = vcmp.le.f32.partialorder %v490_v15, 0.7853982 }
  0xff   :  { %v3100_v25 = vadd.s32 %v3008_v57, %v3027_v39  ;;  %v553_v28 = vshll.u32 %v552_v35, 30  ;;  %v576_v33 = vsub.s32 4, %v552_v35  ;;  %v918_v32 = vsub.s32 32, %v917_v46 }
 0x100   :  { %v461_v43 = vor.u32 %v460_v9, %v459_v48  ;;  %v464_v61 = vshll.u32 %v463_v18, 23  ;;  %v3102_v36 = vshll.u32 %v911_v63, 8  ;;  %v3106_v41 = vand.u32 8388607, %v4022_v5 }
 0x101   :  { %v3108_v1 = vsub.s32 %v550_v7, %v553_v28  ;;  %v916_v15 = vshrl.u32 %v915_v42, 5  ;;  %v921_v47 = vshrl.u32 %v2740_v62, %v918_v32  ;;  %v1011_v52 = vshrl.u32 %v1010_v20, 23 }
 0x102   :  { %v465_v51 = vor.u32 4788187, %v464_v61  ;;  %v920_v57 = vshll.u32 %v2739_v58, %v917_v46  ;;  %v923_v39 = vshll.u32 %v2740_v62, %v917_v46  ;;  %v924_v56 = vshrl.u32 %v4031_v0, %v918_v32 }
 0x103   :  { %v556_v45 = vsub.s32 0, %v3108_v1  ;;  %v577_v60 = vsel %vm492_vm15, %v576_v33, %v552_v35  ;;  %v926_v59 = vshll.u32 %v4031_v0, %v917_v46  ;;  %v927_v7 = vshrl.u32 %v4029_v2, %v918_v32 }
 0x104   :  { %v466_v54 = vand.u32 2147483647, %v465_v51  ;;  %v468_v63 = vcvt.s32.f32 %v461_v43  ;;  %v929_v10 = vshll.u32 %v4029_v2, %v917_v46  ;;  %v930_v3 = vshrl.u32 %v2743_v4, %v918_v32 }
 0x105   :  { %v2237_v42 = vmin.u32 %v556_v45, %v3108_v1  ;;  %v922_v20 = vor.u32 %v921_v47, %v920_v57  ;;  %v925_v48 = vor.u32 %v924_v56, %v923_v39  ;;  %v928_v9 = vor.u32 %v927_v7, %v926_v59 }
 0x106   :  { %v469_v18 = vmul.f32 %v468_v63, %v466_v54  ;;  %v931_v28 = vor.u32 %v930_v3, %v929_v10  ;;  %v932_v61 = vshll.u32 %v2743_v4, %v917_v46  ;;  %v933_v35 = vshrl.u32 %v2744_v11, %v918_v32 }
 0x107   :  { %v558_v33 = vclz %v2237_v42  ;;  %v919_v5 = vshrl.u32 %v2739_v58, %v918_v32  ;;  %v2261_v51 = vadd.s32 4294967169, %v1011_v52  ;;  %v1015_v43 = vor.u32 8388608, %v3106_v41 }
 0x108   :  { %v470_v12 = vxor.u32 2147483648, %v469_v18  ;;  %v579_v40 = vsel %vm3094_vm2, 0, %v577_v60  ;;  %v934_v45 = vor.u32 %v933_v35, %v932_v61  ;;  %vm935_vm3 = vcmp.lt.s32.totalorder %v916_v15, 1 }
 0x109   :  { %v2238_v47 = vadd.s32 4294967294, %v558_v33  ;;  %vm936_vm4 = vcmp.lt.s32.totalorder %v916_v15, 2  ;;  %vm938_vm5 = vcmp.lt.s32.totalorder %v916_v15, 4  ;;  %v943_v57 = vsel %vm935_vm3, %v922_v20, %v925_v48 }
 0x10a   :  { %v471_v46 = vsel %vm388_vm7, %v470_v12, %v469_v18  ;;  %vm937_vm6 = vcmp.lt.s32.totalorder %v916_v15, 3  ;;  %v940_v32 = vsel %vm938_vm5, %v928_v9, 2102212464  ;;  %v944_v52 = vsel %vm938_vm5, %v931_v28, 920167782 }
 0x10b   :  { %v474_v41 = vsel %vm3050_vm12, %v2868_v49, %v471_v46  ;;  %vm2239_vm8 = vcmp.lt.s32.totalorder %v2238_v47, 0  ;;  %v939_v39 = vsel %vm935_vm3, %v919_v5, %v922_v20  ;;  %v945_v56 = vsel %vm937_vm6, %v928_v9, %v944_v52 }
 0x10c   :  { %2582 = vcosq.f32 %v474_v41  ;;  %v561_v60 = vsel %vm2239_vm8, 0, %v2238_v47  ;;  %v946_v59 = vsel %vm936_vm4, %v943_v57, %v945_v56  ;;  %v947_v12 = vsel %vm935_vm3, %v925_v48, %v928_v9 }
 0x10d   :  { %2584 = vsinq.f32 %v474_v41  ;;  %v562_v7 = vsub.s32 32, %v561_v60  ;;  %v566_v54 = vsub.s32 4294967266, %v561_v60  ;;  %v941_v63 = vsel %vm937_vm6, %v925_v48, %v940_v32 }
 0x10e   :  { %v563_v10 = vshll.u32 %v3108_v1, %v561_v60  ;;  %v948_v23 = vsel %vm938_vm5, %v934_v45, 1326507024  ;;  %v3144_v3 = vmul.u32.u64.low %v3102_v36, %v946_v59  ;;  %v3145_v5 = vmul.u32.u64.high %v3102_v36, %v946_v59, %v3144_v3 }
 0x10f   :  { %v564_v42 = vshrl.u32 %v3100_v25, %v562_v7  ;;  %v567_v20 = vadd.s32 127, %v566_v54  ;;  %v949_v18 = vsel %vm937_vm6, %v931_v28, %v948_v23  ;;  %v1017_v9 = vadd.s32 1, %v2261_v51 }
 0x110   :  { %v583_v61 = vadd.s32 3, %v579_v40  ;;  %v942_v35 = vsel %vm936_vm4, %v939_v39, %v941_v63  ;;  %v950_v48 = vsel %vm936_vm4, %v947_v12, %v949_v18  ;;  %v643_v1 = vand.u32 2139095040, %v3090_v13 }
 0x111   :  { %v565_v33 = vor.u32 %v564_v42, %v563_v10  ;;  %v568_v45 = vshll.u32 %v567_v20, 23  ;;  %v3154_v47 = vmul.u32.u64.low %v3102_v36, %v950_v48  ;;  %v3155_v57 = vmul.u32.u64.high %v3102_v36, %v950_v48, %v3154_v47 }
 0x112   :  { %v3161_v25 = vmul.f32 %v197_v21, %v195_v55  ;;  %v961_v40 = vadd.s32 1, %v3145_v5  ;;  %vm1018_vm7 = vcmp.gt.s32.totalorder %v1017_v9, 0  ;;  %v640_v15 = vand.u32 2147483647, %v3090_v13 }
 0x113   :  { %v3169_v28 = vmul.f32 %v301_v17, %v299_v38  ;;  %v569_v51 = vor.u32 4788187, %v568_v45  ;;  %v1019_v46 = vsel %vm1018_vm7, %v1017_v9, 0  ;;  %v644_v32 = vshrl.u32 %v643_v1, 23 }
 0x114   :  { %vm482_vm9 = vcmp.eq.s32.totalorder %v3085_v14, 0  ;;  %vm485_vm10 = vcmp.eq.s32.totalorder %v3085_v14, 2  ;;  %v3173_v8 = vand.u32 3, %v583_v61  ;;  %v958_v31 = vmul.u32 %v3102_v36, %v942_v35 }
 0x115   :  { %v1021_v21 = vand.u32 31, %v1019_v46  ;;  %vm481_vm11 = vcmp.lt.s32.totalorder %v3085_v14, 2  ;;  %v570_v55 = vand.u32 2147483647, %v569_v51  ;;  %v572_v44 = vcvt.s32.f32 %v565_v33 }
 0x116   :  { %vm960_vm12 = vc.u32 %v3155_v57, %v3144_v3  ;;  %v3179_v19 = vshll.u32 %v1015_v43, 8  ;;  %vm478_vm13 = vweird.f32 %v2868_v49  ;;  %v3183_v17 = vshrl.u32 %v1019_v46, 5 }
 0x117   :  { %v962_v38 = vsel %vm960_vm12, %v961_v40, %v3145_v5  ;;  %v1022_v52 = vsub.s32 32, %v1021_v21  ;;  %v3187_v36 = vand.u32 8388607, %v640_v15  ;;  %v573_v41 = vmul.f32 %v572_v44, %v570_v55 }
 0x118   :  { %v963_v39 = vadd.s32 %v962_v38, %v958_v31  ;;  %v1024_v56 = vshll.u32 %v2739_v58, %v1021_v21  ;;  %v2244_v60 = vadd.s32 4294967169, %v644_v32  ;;  %v1027_v43 = vshll.u32 %v2740_v62, %v1021_v21 }
 0x119   :  { %v1025_v59 = vshrl.u32 %v2740_v62, %v1022_v52  ;;  %v1028_v12 = vshrl.u32 %v4031_v0, %v1022_v52  ;;  %v1030_v7 = vshll.u32 %v4031_v0, %v1021_v21  ;;  %v2583_v54 = vpop.eup %2582  ;;  %v574_v63 = vxor.u32 2147483648, %v573_v41 }
 0x11a   :  { %v964_v10 = vadd.s32 536870912, %v963_v39  ;;  %v1031_v23 = vshrl.u32 %v4029_v2, %v1022_v52  ;;  %v1034_v5 = vshrl.u32 %v2743_v4, %v1022_v52  ;;  %v2585_v42 = vpop.eup %2584  ;;  %v486_v20 = vxor.u32 2147483648, %v2583_v54 }
 0x11b   :  { %v1026_v18 = vor.u32 %v1025_v59, %v1024_v56  ;;  %v1033_v9 = vshll.u32 %v4029_v2, %v1021_v21  ;;  %v1036_v61 = vshll.u32 %v2743_v4, %v1021_v21  ;;  %v483_v35 = vxor.u32 2147483648, %v2585_v42 }
 0x11c   :  { %v575_v48 = vsel %vm492_vm15, %v574_v63, %v573_v41  ;;  %v3200_v1 = vshrl.u32 %v964_v10, 30  ;;  %v1029_v33 = vor.u32 %v1028_v12, %v1027_v43  ;;  %v487_v45 = vsel %vm485_vm10, %v486_v20, %v2585_v42  ;;  %v622_v42 = vpop.permute.xlu1 %621 }
 0x11d   :  { %v578_v47 = vsel %vm3094_vm2, %v2870_v50, %v575_v48  ;;  %v1035_v40 = vor.u32 %v1034_v5, %v1033_v9  ;;  %v1037_v51 = vshrl.u32 %v2744_v11, %v1022_v52  ;;  %v484_v46 = vsel %vm482_vm9, %v2583_v54, %v483_v35 }
 0x11e   :  { %2586 = vcosq.f32 %v578_v47  ;;  %v966_v32 = vshll.u32 %v3200_v1, 30  ;;  %v1032_v31 = vor.u32 %v1031_v23, %v1030_v7  ;;  %v488_v21 = vsel %vm481_vm11, %v484_v46, %v487_v45  ;;  %v614_v45 = vpop.permute.xlu0 %613 }
 0x11f   :  { %2588 = vsinq.f32 %v578_v47  ;;  %v1038_v55 = vor.u32 %v1037_v51, %v1036_v61  ;;  %vm1039_vm14 = vcmp.lt.s32.totalorder %v3183_v17, 1  ;;  %v489_v24 = vsel %vm478_vm13, nan, %v488_v21 }
 0x120   :  { %v3216_v44 = vsub.s32 %v963_v39, %v966_v32  ;;  %vm1040_vm15 = vcmp.lt.s32.totalorder %v3183_v17, 2  ;;  %vm1042_vm1 = vcmp.lt.s32.totalorder %v3183_v17, 4  ;;  %v2352_v38 = vpack.c.bf16 %v489_v24, %v489_v24 }
 0x121   :  { %vm1041_vm2 = vcmp.lt.s32.totalorder %v3183_v17, 3  ;;  %v1047_v14 = vsel %vm1039_vm14, %v1026_v18, %v1029_v33  ;;  %v1048_v41 = vsel %vm1042_vm1, %v1035_v40, 920167782  ;;  %v1044_v59 = vsel %vm1042_vm1, %v1032_v31, 2102212464 }
 0x122   :  { %v969_v56 = vsub.s32 0, %v3216_v44  ;;  %v1049_v49 = vsel %vm1041_vm2, %v1032_v31, %v1048_v41  ;;  %v1051_v39 = vsel %vm1039_vm14, %v1029_v33, %v1032_v31  ;;  %602 = vst [vmem:[#allocation2 + $0x4] sm:$0xf] %v2352_v38  ;;  %v1023_v43 = vshrl.u32 %v2739_v58, %v1022_v52 }
 0x123   :  { %v1050_v12 = vsel %vm1040_vm15, %v1047_v14, %v1049_v49  ;;  %v1052_v7 = vsel %vm1042_vm1, %v1038_v55, 1326507024  ;;  %v650_v54 = vadd.s32 1, %v2244_v60  ;;  %v1045_v52 = vsel %vm1041_vm2, %v1029_v33, %v1044_v59 }
 0x124   :  { %v2258_v63 = vmin.u32 %v969_v56, %v3216_v44  ;;  %v1053_v10 = vsel %vm1041_vm2, %v1035_v40, %v1052_v7  ;;  %v3235_v23 = vmul.u32.u64.low %v3179_v19, %v1050_v12  ;;  %v3236_v5 = vmul.u32.u64.high %v3179_v19, %v1050_v12, %v3235_v23 }
 0x125   :  { %v1043_v20 = vsel %vm1039_vm14, %v1023_v43, %v1026_v18  ;;  %v1054_v60 = vsel %vm1040_vm15, %v1051_v39, %v1053_v10  ;;  %vm651_vm3 = vcmp.gt.s32.totalorder %v650_v54, 0  ;;  %v199_v47 = vxor.u32 2147483648, %v3161_v25 }
 0x126   :  { %v971_v9 = vclz %v2258_v63  ;;  %v3246_v61 = vmul.u32.u64.low %v3179_v19, %v1054_v60  ;;  %v3247_v35 = vmul.u32.u64.high %v3179_v19, %v1054_v60, %v3246_v61  ;;  %v652_v48 = vsel %vm651_vm3, %v650_v54, 0 }
 0x127   :  { %v654_v40 = vand.u32 31, %v652_v48  ;;  %v625_v18 = vsel %vm69_vm0, %v614_v45, %v622_v42  ;;  %vm582_vm4 = vweird.f32 %v2870_v50  ;;  %v1046_v51 = vsel %vm1040_vm15, %v1043_v20, %v1045_v52  ;;  %v2525_v20 = vld [vmem:[#allocation8 + $0x78] sm:$0xff]   ;;  %v3291_v45 = vpop.permute.xlu0 %1141 }
 0x128   :  { %v2259_v33 = vadd.s32 4294967294, %v971_v9  ;;  %v1065_v46 = vadd.s32 1, %v3236_v5  ;;  %v648_v32 = vor.u32 8388608, %v3187_v36  ;;  %v303_v31 = vxor.u32 2147483648, %v3169_v28  ;;  %2364 = vmatprep.subr.bf16.mxu0 %v2525_v20 }
 0x129   :  { %vm585_vm5 = vcmp.lt.s32.totalorder %v3173_v8, 2  ;;  %vm586_vm6 = vcmp.eq.s32.totalorder %v3173_v8, 0  ;;  %v655_v21 = vsub.s32 32, %v654_v40  ;;  %vm589_vm8 = vcmp.eq.s32.totalorder %v3173_v8, 2 }
 0x12a   :  { %v3263_v55 = vadd.s32 %v3144_v3, %v3155_v57  ;;  %vm2260_vm7 = vcmp.lt.s32.totalorder %v2259_v33, 0  ;;  %vm1064_vm9 = vc.u32 %v3247_v35, %v3235_v23  ;;  %v1062_v36 = vmul.u32 %v3179_v19, %v1046_v51 }
 0x12b   :  { %v2587_v17 = vpop.eup %2586  ;;  %v3267_v24 = vsel %vm2260_vm7, 0, %v2259_v33  ;;  %v1066_v38 = vsel %vm1064_vm9, %v1065_v46, %v3236_v5  ;;  %v632_v14 = vmul.f32 %v3032_v16, %v625_v18  ;;  %v657_v59 = vshll.u32 %v2739_v58, %v654_v40  ;;  %v2526_v18 = vld [vmem:[#allocation8 + $0x38] sm:$0xff]  }
 0x12c   :  { %v2589_v41 = vpop.eup %2588  ;;  %v590_v56 = vxor.u32 2147483648, %v2587_v17  ;;  %v658_v3 = vshrl.u32 %v2740_v62, %v655_v21  ;;  %v3274_v57 = vshll.u32 %v648_v32, 8  ;;  %v1067_v39 = vadd.s32 %v1066_v38, %v1062_v36  ;;  %2365 = vmatpush3.bf16.msra.mxu0 %v2526_v18 }
 0x12d   :  { %v587_v49 = vxor.u32 2147483648, %v2589_v41  ;;  %v660_v43 = vshll.u32 %v2740_v62, %v654_v40  ;;  %v661_v12 = vshrl.u32 %v4031_v0, %v655_v21  ;;  %v979_v7 = vsub.s32 4294967266, %v3267_v24 }
 0x12e   :  { %v591_v19 = vsel %vm589_vm8, %v590_v56, %v2589_v41  ;;  %v663_v16 = vshll.u32 %v4031_v0, %v654_v40  ;;  %v664_v54 = vshrl.u32 %v4029_v2, %v655_v21  ;;  %v1068_v10 = vadd.s32 536870912, %v1067_v39 }
 0x12f   :  { %v588_v63 = vsel %vm586_vm6, %v2587_v17, %v587_v49  ;;  %v666_v5 = vshll.u32 %v4029_v2, %v654_v40  ;;  %v667_v42 = vshrl.u32 %v2743_v4, %v655_v21  ;;  %v3289_v60 = vshrl.u32 %v652_v48, 5 }
 0x130   :  { %v592_v52 = vsel %vm585_vm5, %v588_v63, %v591_v19  ;;  %v659_v9 = vor.u32 %v658_v3, %v657_v59  ;;  %v662_v61 = vor.u32 %v661_v12, %v660_v43  ;;  %v3295_v51 = vshrl.u32 %v1068_v10, 30  ;;  %v2527_v59 = vld [vmem:[#allocation8 + $0x70] sm:$0xff]   ;;  %v1147_v19 = vpop.permute.xlu1 %1146 }
 0x131   :  { %v593_v33 = vsel %vm582_vm4, nan, %v592_v52  ;;  %v665_v46 = vor.u32 %v664_v54, %v663_v16  ;;  %v668_v32 = vor.u32 %v667_v42, %v666_v5  ;;  %v980_v36 = vadd.s32 127, %v979_v7  ;;  %2366 = vmatprep.subr.bf16.mxu0 %v2527_v59  ;;  %v1155_v7 = vpop.permute.xlu0 %1154  ;;  %v2529_v5 = vld [vmem:[#allocation8 + $0x68] sm:$0xff]   ;;  %v2531_v59 = vld [vmem:[#allocation8 + $0x60] sm:$0xff]  }
 0x132   :  { %v2353_v17 = vpack.c.bf16 %v593_v33, %v593_v33  ;;  %v669_v8 = vshll.u32 %v2743_v4, %v654_v40  ;;  %v670_v48 = vshrl.u32 %v2744_v11, %v655_v21  ;;  %vm117_vm10 = vcmp.lt.s32.totalorder %v2810_v26, 0  ;;  %v2528_v40 = vld [vmem:[#allocation8 + $0x30] sm:$0xff]   ;;  %v2530_v33 = vld [vmem:[#allocation8 + $0x28] sm:$0xff]  }
 0x133   :  { %v975_v38 = vsub.s32 32, %v3267_v24  ;;  %v1070_v41 = vshll.u32 %v3295_v51, 30  ;;  %v656_v50 = vshrl.u32 %v2739_v58, %v655_v21  ;;  %v3304_v56 = vadd.f32 %v3082_v22, %v632_v14  ;;  %2367 = vmatpush3.bf16.msra.mxu0 %v2528_v40  ;;  %v2532_v40 = vld [vmem:[#allocation8 + $0x20] sm:$0xff]  }
 0x134   :  { %603 = vst [vmem:[#allocation2 + $0x1c] sm:$0xf] %v2353_v17  ;;  %v671_v3 = vor.u32 %v670_v48, %v669_v8  ;;  %vm672_vm11 = vcmp.lt.s32.totalorder %v3289_v60, 1  ;;  %vm674_vm12 = vcmp.lt.s32.totalorder %v3289_v60, 3  ;;  %vm675_vm13 = vcmp.lt.s32.totalorder %v3289_v60, 4  ;;  %2368 = vmatprep.subr.bf16.mxu0 %v2529_v5 }
 0x135   :  { %v3309_v49 = vsub.s32 %v1067_v39, %v1070_v41  ;;  %v677_v43 = vsel %vm675_vm13, %v665_v46, 2102212464  ;;  %v680_v21 = vsel %vm672_vm11, %v659_v9, %v662_v61  ;;  %v681_v22 = vsel %vm675_vm13, %v668_v32, 920167782 }
 0x136   :  { %v981_v14 = vshll.u32 %v980_v36, 23  ;;  %vm673_vm14 = vcmp.lt.s32.totalorder %v3289_v60, 2  ;;  %v682_v12 = vsel %vm674_vm12, %v665_v46, %v681_v22  ;;  %v684_v39 = vsel %vm672_vm11, %v662_v61, %v665_v46 }
 0x137   :  { %v1073_v16 = vsub.s32 0, %v3309_v49  ;;  %v676_v54 = vsel %vm672_vm11, %v656_v50, %v659_v9  ;;  %v683_v63 = vsel %vm673_vm14, %v680_v21, %v682_v12  ;;  %v685_v10 = vsel %vm675_vm13, %v671_v3, 1326507024  ;;  %2369 = vmatpush3.bf16.msra.mxu0 %v2530_v33  ;;  %v3390_v12 = vld [vmem:[%s4018_s4] ss:$0 sm:$0xff] }
 0x138   :  { %v678_v42 = vsel %vm674_vm12, %v662_v61, %v677_v43  ;;  %v686_v20 = vsel %vm674_vm12, %v668_v32, %v685_v10  ;;  %v3334_v52 = vmul.u32.u64.low %v3274_v57, %v683_v63  ;;  %v3335_v18 = vmul.u32.u64.high %v3274_v57, %v683_v63, %v3334_v52  ;;  %v3345_v61 = vld [vmem:[%s4017_s3] ss:$0 sm:$0xff]  ;;  %2370 = vmatprep.subr.bf16.mxu0 %v2531_v59 }
 0x139   :  { %v977_v9 = vshrl.u32 %v3263_v55, %v975_v38  ;;  %v2262_v46 = vmin.u32 %v1073_v16, %v3309_v49  ;;  %v687_v17 = vsel %vm673_vm14, %v684_v39, %v686_v20  ;;  %v1158_v32 = vsel %vm69_vm0, %v1147_v19, %v1155_v7  ;;  %v2534_v10 = vld [vmem:[#allocation8 + $0x18] sm:$0xff]  }
 0x13a   :  { %vm221_vm15 = vcmp.lt.s32.totalorder %v2817_v34, 0  ;;  %v976_v36 = vshll.u32 %v3216_v44, %v3267_v24  ;;  %v3353_v55 = vmul.u32.u64.low %v3274_v57, %v687_v17  ;;  %v3354_v8 = vmul.u32.u64.high %v3274_v57, %v687_v17, %v3353_v55  ;;  %v2535_v17 = vld [vmem:[#allocation8 + $0x50] sm:$0xff]  }
 0x13b   :  { %v982_v48 = vor.u32 4788187, %v981_v14  ;;  %v1075_v38 = vclz %v2262_v46  ;;  %v679_v41 = vsel %vm673_vm14, %v676_v54, %v678_v42  ;;  %v747_v50 = vand.u32 2139095040, %v3304_v56  ;;  %2371 = vmatpush3.bf16.msra.mxu0 %v2532_v40  ;;  %v2533_v54 = vld [vmem:[#allocation8 + $0x58] sm:$0xff]  }
 0x13c   :  { %v200_v3 = vsel %vm117_vm10, %v199_v47, %v3161_v25  ;;  %v304_v44 = vsel %vm221_vm15, %v303_v31, %v3169_v28  ;;  %v698_v24 = vadd.s32 1, %v3335_v18  ;;  %v1165_v60 = vmul.f32 %v3345_v61, %v1158_v32  ;;  %2372 = vmatprep.subr.bf16.mxu0 %v2533_v54 }
 0x13d   :  { %v978_v43 = vor.u32 %v977_v9, %v976_v36  ;;  %v2263_v21 = vadd.s32 4294967294, %v1075_v38  ;;  %v4026_v22 = vand.u32 2147483647, %v3304_v56  ;;  %v748_v14 = vshrl.u32 %v747_v50, 23 }
 0x13e   :  { %vm3374_vm1 = vcmp.le.f32.partialorder %v115_v30, 0.7853982  ;;  %v4039_v47 = vand.u32 2147483647, %v2817_v34  ;;  %v695_v31 = vmul.u32 %v3274_v57, %v679_v41  ;;  %vm697_vm3 = vc.u32 %v3354_v8, %v3334_v52  ;;  %v1151_v30 = vpop.permute.xlu1 %1150 }
 0x13f   :  { %v203_v39 = vsel %vm3374_vm1, %v2810_v26, %v200_v3  ;;  %v983_v19 = vand.u32 2147483647, %v982_v48  ;;  %v699_v7 = vsel %vm697_vm3, %v698_v24, %v3335_v18  ;;  %v2248_v16 = vadd.s32 4294967169, %v748_v14  ;;  %2373 = vmatpush3.bf16.msra.mxu0 %v2534_v10  ;;  %v1405_v48 = vpop.permute.xlu0 %1404 }
 0x140   :  { %vm3380_vm2 = vcmp.le.f32.partialorder %v4039_v47, 0.7853982  ;;  %vm2264_vm4 = vcmp.lt.s32.totalorder %v2263_v21, 0  ;;  %v700_v63 = vadd.s32 %v699_v7, %v695_v31  ;;  %v985_v5 = vcvt.s32.f32 %v978_v43  ;;  %2374 = vmatprep.subr.bf16.mxu0 %v2535_v17 }
 0x141   :  { %v307_v57 = vsel %vm3380_vm2, %v2817_v34, %v304_v44  ;;  %v751_v42 = vand.u32 8388607, %v4026_v22  ;;  %v754_v20 = vadd.s32 1, %v2248_v16  ;;  %v3402_v33 = vadd.f32 %v3390_v12, %v1165_v60 }
 0x142   :  { %2590 = vcosq.f32 %v203_v39  ;;  %v701_v18 = vadd.s32 536870912, %v700_v63  ;;  %v3404_v9 = vmul.f32 %v985_v5, %v983_v19  ;;  %v3406_v46 = vsel %vm2264_vm4, 0, %v2263_v21  ;;  %v1396_v55 = vpop.permute.xlu1 %1395 }
 0x143   :  { %2592 = vsinq.f32 %v203_v39  ;;  %vm755_vm5 = vcmp.gt.s32.totalorder %v754_v20, 0  ;;  %v752_v38 = vor.u32 8388608, %v751_v42  ;;  %v4025_v50 = vand.u32 2147483647, %v3402_v33 }
 0x144   :  { %2594 = vcosq.f32 %v307_v57  ;;  %v3408_v32 = vshrl.u32 %v701_v18, 30  ;;  %v756_v36 = vsel %vm755_vm5, %v754_v20, 0  ;;  %v1157_v59 = vsel %vm69_vm0, %v3291_v45, %v1151_v30 }
 0x145   :  { %v758_v41 = vand.u32 31, %v756_v36  ;;  %2596 = vsinq.f32 %v307_v57  ;;  %v1083_v3 = vsub.s32 4294967266, %v3406_v46  ;;  %v987_v24 = vxor.u32 2147483648, %v3404_v9 }
 0x146   :  { %v703_v44 = vshll.u32 %v3408_v32, 30  ;;  %v1063_v60 = vadd.s32 %v3235_v23, %v3247_v35  ;;  %v3421_v43 = vsel %vm69_vm0, %v1396_v55, %v1405_v48  ;;  %v696_v21 = vadd.s32 %v3334_v52, %v3354_v8 }
 0x147   :  { %v759_v40 = vsub.s32 32, %v758_v41  ;;  %v1280_v14 = vand.u32 2139095040, %v3402_v33  ;;  %v3429_v47 = vmul.f32 %v3345_v61, %v1157_v59  ;;  %v1079_v31 = vsub.s32 32, %v3406_v46 }
 0x148   :  { %v3425_v45 = vsub.s32 %v700_v63, %v703_v44  ;;  %v3433_v23 = vshll.u32 %v752_v38, 8  ;;  %v3437_v35 = vand.u32 8388607, %v4025_v50  ;;  %v1084_v39 = vadd.s32 127, %v1083_v3 }
 0x149   :  { %v762_v30 = vshrl.u32 %v2740_v62, %v759_v40  ;;  %v765_v8 = vshrl.u32 %v4031_v0, %v759_v40  ;;  %v768_v19 = vshrl.u32 %v4029_v2, %v759_v40  ;;  %v761_v61 = vshll.u32 %v2739_v58, %v758_v41 }
 0x14a   :  { %v706_v52 = vsub.s32 0, %v3425_v45  ;;  %v764_v7 = vshll.u32 %v2740_v62, %v758_v41  ;;  %v767_v16 = vshll.u32 %v4031_v0, %v758_v41  ;;  %v771_v54 = vshrl.u32 %v2743_v4, %v759_v40 }
 0x14b   :  { %v757_v63 = vshrl.u32 %v756_v36, 5  ;;  %v770_v10 = vshll.u32 %v4029_v2, %v758_v41  ;;  %v1281_v5 = vshrl.u32 %v1280_v14, 23  ;;  %v763_v42 = vor.u32 %v762_v30, %v761_v61 }
 0x14c   :  { %v2245_v57 = vmin.u32 %v706_v52, %v3425_v45  ;;  %v766_v20 = vor.u32 %v765_v8, %v764_v7  ;;  %v769_v18 = vor.u32 %v768_v19, %v767_v16  ;;  %v774_v17 = vshrl.u32 %v2744_v11, %v759_v40 }
 0x14d   :  { %v1080_v55 = vshll.u32 %v3309_v49, %v3406_v46  ;;  %v1081_v48 = vshrl.u32 %v1063_v60, %v1079_v31  ;;  %vm642_vm6 = vcmp.lt.s32.totalorder %v3090_v13, 0  ;;  %v772_v59 = vor.u32 %v771_v54, %v770_v10 }
 0x14e   :  { %v708_v38 = vclz %v2245_v57  ;;  %v1085_v44 = vshll.u32 %v1084_v39, 23  ;;  %v726_v36 = vsub.s32 4, %v3408_v32  ;;  %v773_v14 = vshll.u32 %v2743_v4, %v758_v41 }
 0x14f   :  { %v3452_v3 = vpop.eup %2590  ;;  %v1285_v30 = vor.u32 8388608, %v3437_v35  ;;  %vm776_vm8 = vcmp.lt.s32.totalorder %v757_v63, 1  ;;  %vm779_vm7 = vcmp.lt.s32.totalorder %v757_v63, 4  ;;  %v2275_v49 = vadd.s32 4294967169, %v1281_v5 }
 0x150   :  { %v3457_v52 = vpop.eup %2592  ;;  %v2246_v8 = vadd.s32 4294967294, %v708_v38  ;;  %vm4027_vm9 = vcmp.lt.s32.totalorder %v2991_v27, 0  ;;  %v760_v60 = vshrl.u32 %v2739_v58, %v759_v40  ;;  %v775_v31 = vor.u32 %v774_v17, %v773_v14 }
 0x151   :  { %v3459_v46 = vpop.eup %2594  ;;  %v781_v39 = vsel %vm779_vm7, %v769_v18, 2102212464  ;;  %v784_v19 = vsel %vm776_vm8, %v763_v42, %v766_v20  ;;  %vm3467_vm11 = vcmp.le.f32.partialorder %v640_v15, 0.7853982  ;;  %vm777_vm13 = vcmp.lt.s32.totalorder %v757_v63, 2 }
 0x152   :  { %vm2247_vm12 = vcmp.lt.s32.totalorder %v2246_v8, 0  ;;  %vm778_vm14 = vcmp.lt.s32.totalorder %v757_v63, 3  ;;  %v785_v35 = vsel %vm779_vm7, %v772_v59, 920167782  ;;  %v3472_v61 = vpop.eup %2596  ;;  %v780_v40 = vsel %vm776_vm8, %v760_v60, %v763_v42 }
 0x153   :  { %v711_v7 = vsel %vm2247_vm12, 0, %v2246_v8  ;;  %v782_v16 = vsel %vm778_vm14, %v766_v20, %v781_v39  ;;  %v786_v54 = vsel %vm778_vm14, %v769_v18, %v785_v35  ;;  %v788_v5 = vsel %vm776_vm8, %v766_v20, %v769_v18 }
 0x154   :  { %v712_v57 = vsub.s32 32, %v711_v7  ;;  %v716_v10 = vsub.s32 4294967266, %v711_v7  ;;  %v787_v15 = vsel %vm777_vm13, %v784_v19, %v786_v54  ;;  %v713_v17 = vshll.u32 %v3425_v45, %v711_v7 }
 0x155   :  { %v789_v38 = vsel %vm779_vm7, %v775_v31, 1326507024  ;;  %v3482_v14 = vmul.u32.u64.low %v3433_v23, %v787_v15  ;;  %v3483_v50 = vmul.u32.u64.high %v3433_v23, %v787_v15, %v3482_v14  ;;  %v1287_v39 = vadd.s32 1, %v2275_v49 }
 0x156   :  { %v714_v42 = vshrl.u32 %v696_v21, %v712_v57  ;;  %v717_v8 = vadd.s32 127, %v716_v10  ;;  %v790_v60 = vsel %vm778_vm14, %v772_v59, %v789_v38  ;;  %v1082_v35 = vor.u32 %v1081_v48, %v1080_v55 }
 0x157   :  { %v1086_v22 = vor.u32 4788187, %v1085_v44  ;;  %v727_v20 = vsel %vm642_vm6, %v726_v36, %v3408_v32  ;;  %v791_v45 = vsel %vm777_vm13, %v788_v5, %v790_v60  ;;  %v783_v21 = vsel %vm777_vm13, %v780_v40, %v782_v16 }
 0x158   :  { %v715_v18 = vor.u32 %v714_v42, %v713_v17  ;;  %v718_v31 = vshll.u32 %v717_v8, 23  ;;  %v3492_v19 = vmul.u32.u64.low %v3433_v23, %v791_v45  ;;  %v3493_v7 = vmul.u32.u64.high %v3433_v23, %v791_v45, %v3492_v19 }
 0x159   :  { %v802_v54 = vadd.s32 1, %v3483_v50  ;;  %vm1288_vm3 = vcmp.gt.s32.totalorder %v1287_v39, 0  ;;  %v3499_v55 = vadd.f32 %v3390_v12, %v3429_v47  ;;  %v3506_v32 = vsel %vm4027_vm9, %v987_v24, %v3404_v9 }
 0x15a   :  { %v719_v48 = vor.u32 4788187, %v718_v31  ;;  %v1289_v59 = vsel %vm1288_vm3, %v1287_v39, 0  ;;  %v3508_v44 = vshll.u32 %v1285_v30, 8  ;;  %v1087_v63 = vand.u32 2147483647, %v1086_v22 }
 0x15b   :  { %v1089_v36 = vcvt.s32.f32 %v1082_v35  ;;  %v729_v49 = vsel %vm3467_vm11, 0, %v727_v20  ;;  %v1291_v40 = vand.u32 31, %v1289_v59  ;;  %v722_v12 = vcvt.s32.f32 %v715_v18 }
 0x15c   :  { %v720_v16 = vand.u32 2147483647, %v719_v48  ;;  %v799_v47 = vmul.u32 %v3433_v23, %v783_v21  ;;  %vm801_vm4 = vc.u32 %v3493_v7, %v3482_v14  ;;  %v3516_v24 = vshrl.u32 %v1289_v59, 5 }
 0x15d   :  { %v803_v9 = vsel %vm801_vm4, %v802_v54, %v3483_v50  ;;  %v1292_v57 = vsub.s32 32, %v1291_v40  ;;  %v1176_v30 = vand.u32 2139095040, %v3499_v55  ;;  %v1294_v15 = vshll.u32 %v2739_v58, %v1291_v40 }
 0x15e   :  { %v723_v22 = vmul.f32 %v722_v12, %v720_v16  ;;  %v804_v10 = vadd.s32 %v803_v9, %v799_v47  ;;  %v1297_v5 = vshll.u32 %v2740_v62, %v1291_v40  ;;  %v1300_v38 = vshll.u32 %v4031_v0, %v1291_v40 }
 0x15f   :  { %v1295_v17 = vshrl.u32 %v2740_v62, %v1292_v57  ;;  %v1298_v23 = vshrl.u32 %v4031_v0, %v1292_v57  ;;  %v1301_v42 = vshrl.u32 %v4029_v2, %v1292_v57  ;;  %v1303_v60 = vshll.u32 %v4029_v2, %v1291_v40 }
 0x160   :  { %v724_v50 = vxor.u32 2147483648, %v723_v22  ;;  %v805_v8 = vadd.s32 536870912, %v804_v10  ;;  %v1304_v39 = vshrl.u32 %v2743_v4, %v1292_v57  ;;  %v4044_v35 = vand.u32 2147483647, %v2991_v27 }
 0x161   :  { %v1296_v45 = vor.u32 %v1295_v17, %v1294_v15  ;;  %v1299_v18 = vor.u32 %v1298_v23, %v1297_v5  ;;  %v1306_v31 = vshll.u32 %v2743_v4, %v1291_v40  ;;  %v1307_v19 = vshrl.u32 %v2744_v11, %v1292_v57 }
 0x162   :  { %vm3529_vm5 = vcmp.le.f32.partialorder %v4044_v35, 0.7853982  ;;  %v725_v21 = vsel %vm642_vm6, %v724_v50, %v723_v22  ;;  %v3537_v54 = vshrl.u32 %v805_v8, 30  ;;  %v1302_v48 = vor.u32 %v1301_v42, %v1300_v38 }
 0x163   :  { %v1305_v59 = vor.u32 %v1304_v39, %v1303_v60  ;;  %v1090_v16 = vmul.f32 %v1089_v36, %v1087_v63  ;;  %v728_v12 = vsel %vm3467_vm11, %v3090_v13, %v725_v21  ;;  %v733_v47 = vadd.s32 3, %v729_v49 }
 0x164   :  { %v1177_v9 = vshrl.u32 %v1176_v30, 23  ;;  %2598 = vcosq.f32 %v728_v12  ;;  %v807_v15 = vshll.u32 %v3537_v54, 30  ;;  %v1308_v40 = vor.u32 %v1307_v19, %v1306_v31 }
 0x165   :  { %vm1309_vm8 = vcmp.lt.s32.totalorder %v3516_v24, 1  ;;  %2600 = vsinq.f32 %v728_v12  ;;  %v1293_v22 = vshrl.u32 %v2739_v58, %v1292_v57  ;;  %vm1312_vm6 = vcmp.lt.s32.totalorder %v3516_v24, 4 }
 0x166   :  { %v1317_v5 = vsel %vm1309_vm8, %v1296_v45, %v1299_v18  ;;  %vm1009_vm7 = vcmp.lt.s32.totalorder %v3071_v53, 0  ;;  %v3547_v63 = vsub.s32 %v804_v10, %v807_v15  ;;  %vm1311_vm11 = vcmp.lt.s32.totalorder %v3516_v24, 3 }
 0x167   :  { %v1314_v41 = vsel %vm1312_vm6, %v1302_v48, 2102212464  ;;  %v1318_v36 = vsel %vm1312_vm6, %v1305_v59, 920167782  ;;  %v3550_v49 = vand.u32 3, %v733_v47  ;;  %vm1310_vm12 = vcmp.lt.s32.totalorder %v3516_v24, 2 }
 0x168   :  { %v1319_v30 = vsel %vm1311_vm11, %v1302_v48, %v1318_v36  ;;  %v1321_v17 = vsel %vm1309_vm8, %v1299_v18, %v1302_v48  ;;  %v810_v23 = vsub.s32 0, %v3547_v63  ;;  %v1313_v57 = vsel %vm1309_vm8, %v1293_v22, %v1296_v45 }
 0x169   :  { %v1320_v38 = vsel %vm1310_vm12, %v1317_v5, %v1319_v30  ;;  %v1322_v42 = vsel %vm1312_vm6, %v1308_v40, 1326507024  ;;  %v1315_v50 = vsel %vm1311_vm11, %v1299_v18, %v1314_v41  ;;  %v3565_v39 = vsel %vm3529_vm5, %v2991_v27, %v3506_v32 }
 0x16a   :  { %v1323_v10 = vsel %vm1311_vm11, %v1305_v59, %v1322_v42  ;;  %v3557_v8 = vmul.u32.u64.low %v3508_v44, %v1320_v38  ;;  %v3558_v60 = vmul.u32.u64.high %v3508_v44, %v1320_v38, %v3557_v8  ;;  %v2249_v35 = vmin.u32 %v810_v23, %v3547_v63 }
 0x16b   :  { %v1324_v45 = vsel %vm1310_vm12, %v1321_v17, %v1323_v10  ;;  %v2271_v31 = vadd.s32 4294967169, %v1177_v9  ;;  %v1091_v19 = vxor.u32 2147483648, %v1090_v16  ;;  %vm746_vm13 = vcmp.lt.s32.totalorder %v3304_v56, 0  ;;  %v1401_v9 = vpop.permute.xlu1 %1400 }
 0x16c   :  { %v3572_v18 = vmul.u32.u64.low %v3508_v44, %v1324_v45  ;;  %v3573_v21 = vmul.u32.u64.high %v3508_v44, %v1324_v45, %v3572_v18  ;;  %v4047_v48 = vand.u32 2147483647, %v3304_v56  ;;  %v812_v32 = vclz %v2249_v35 }
 0x16d   :  { %v1316_v12 = vsel %vm1310_vm12, %v1313_v57, %v1315_v50  ;;  %v4028_v47 = vand.u32 2147483647, %v3499_v55  ;;  %2602 = vcosq.f32 %v3565_v39  ;;  %vm735_vm3 = vcmp.lt.s32.totalorder %v3550_v49, 2 }
 0x16e   :  { %vm3577_vm14 = vcmp.le.f32.partialorder %v4047_v48, 0.7853982  ;;  %v1335_v15 = vadd.s32 1, %v3558_v60  ;;  %v1183_v40 = vadd.s32 1, %v2271_v31  ;;  %vm732_vm4 = vweird.f32 %v3090_v13  ;;  %v3611_v48 = vld [vmem:[%s4017_s3 + $0x1] ss:$0 sm:$0xff] }
 0x16f   :  { %vm736_vm8 = vcmp.eq.s32.totalorder %v3550_v49, 0  ;;  %vm739_vm6 = vcmp.eq.s32.totalorder %v3550_v49, 2  ;;  %v2250_v22 = vadd.s32 4294967294, %v812_v32  ;;  %v830_v24 = vsub.s32 4, %v3537_v54  ;;  %v1409_v45 = vpop.permute.xlu1 %1408 }
 0x170   :  { %v3593_v5 = vsel %vm1009_vm7, %v1091_v19, %v1090_v16  ;;  %v1332_v41 = vmul.u32 %v3508_v44, %v1316_v12  ;;  %vm1334_vm11 = vc.u32 %v3573_v21, %v3557_v8  ;;  %vm1184_vm12 = vcmp.gt.s32.totalorder %v1183_v40, 0 }
 0x171   :  { %vm2251_vm9 = vcmp.lt.s32.totalorder %v2250_v22, 0  ;;  %v1336_v36 = vsel %vm1334_vm11, %v1335_v15, %v3558_v60  ;;  %v3601_v30 = vand.u32 8388607, %v4028_v47  ;;  %v1185_v17 = vsel %vm1184_vm12, %v1183_v40, 0  ;;  %v2599_v23 = vpop.eup %2598  ;;  %v2546_v47 = vld [vmem:[#allocation8 + $0xf0] sm:$0xff]  }
 0x172   :  { %v800_v57 = vadd.s32 %v3482_v14, %v3493_v7  ;;  %v815_v16 = vsel %vm2251_vm9, 0, %v2250_v22  ;;  %v1337_v38 = vadd.s32 %v1336_v36, %v1332_v41  ;;  %v1187_v42 = vand.u32 31, %v1185_v17  ;;  %v2601_v44 = vpop.eup %2600 }
 0x173   :  { %v740_v50 = vxor.u32 2147483648, %v2599_v23  ;;  %v816_v10 = vsub.s32 32, %v815_v16  ;;  %v820_v35 = vsub.s32 4294967266, %v815_v16  ;;  %v831_v60 = vsel %vm746_vm13, %v830_v24, %v3537_v54 }
 0x174   :  { %v737_v31 = vxor.u32 2147483648, %v2601_v44  ;;  %v1338_v19 = vadd.s32 536870912, %v1337_v38  ;;  %v1188_v18 = vsub.s32 32, %v1187_v42  ;;  %v1418_v14 = vmul.f32 %v3611_v48, %v3421_v43 }
 0x175   :  { %v741_v7 = vsel %vm739_vm6, %v740_v50, %v2601_v44  ;;  %v817_v32 = vshll.u32 %v3547_v63, %v815_v16  ;;  %v818_v12 = vshrl.u32 %v800_v57, %v816_v10  ;;  %v821_v15 = vadd.s32 127, %v820_v35 }
 0x176   :  { %v738_v54 = vsel %vm736_vm8, %v2599_v23, %v737_v31  ;;  %v833_v40 = vsel %vm3577_vm14, 0, %v831_v60  ;;  %v3622_v22 = vshrl.u32 %v1338_v19, 30  ;;  %v3626_v24 = vsel %vm69_vm0, %v1401_v9, %v1409_v45 }
 0x177   :  { %v742_v43 = vsel %vm735_vm3, %v738_v54, %v741_v7  ;;  %v819_v41 = vor.u32 %v818_v12, %v817_v32  ;;  %v822_v36 = vshll.u32 %v821_v15, 23  ;;  %v1181_v63 = vor.u32 8388608, %v3601_v30  ;;  %v2536_v7 = vld [vmem:[#allocation8 + $0x10] sm:$0xff]   ;;  %v2537_v32 = vld [vmem:[#allocation8 + $0x48] sm:$0xff]  }
 0x178   :  { %v743_v57 = vsel %vm732_vm4, nan, %v742_v43  ;;  %v1340_v23 = vshll.u32 %v3622_v22, 30  ;;  %v1191_v16 = vshrl.u32 %v2740_v62, %v1188_v18  ;;  %v1194_v44 = vshrl.u32 %v4031_v0, %v1188_v18  ;;  %v2540_v43 = vld [vmem:[#allocation8 + $0xf8] sm:$0xff]   ;;  %2375 = vmatpush3.bf16.msra.mxu0 %v2536_v7 }
 0x179   :  { %v2354_v50 = vpack.c.bf16 %v743_v57, %v743_v57  ;;  %v823_v37 = vor.u32 4788187, %v822_v36  ;;  %v3636_v9 = vshrl.u32 %v1185_v17, 5  ;;  %v1190_v49 = vshll.u32 %v2739_v58, %v1187_v42  ;;  %2376 = vmatprep.subr.bf16.mxu0 %v2537_v32  ;;  %2386 = vmatprep.subr.bf16.mxu1 %v2540_v43 }
 0x17a   :  { %v826_v10 = vcvt.s32.f32 %v819_v41  ;;  %v3639_v35 = vsub.s32 %v1337_v38, %v1340_v23  ;;  %v1193_v30 = vshll.u32 %v2740_v62, %v1187_v42  ;;  %v1197_v13 = vshrl.u32 %v4029_v2, %v1188_v18  ;;  %v3643_v60 = vpop.eup %2602 }
 0x17b   :  { %856 = vst [vmem:[#allocation2 + $0x8] sm:$0xf] %v2354_v50  ;;  %v824_v45 = vand.u32 2147483647, %v823_v37  ;;  %v1196_v31 = vshll.u32 %v4031_v0, %v1187_v42  ;;  %v1199_v19 = vshll.u32 %v4029_v2, %v1187_v42  ;;  %v1200_v17 = vshrl.u32 %v2743_v4, %v1188_v18  ;;  %v2538_v50 = vld [vmem:[#allocation8 + $0x8] sm:$0xff]   ;;  %v2542_v37 = vld [vmem:[#allocation8 + $0xb8] sm:$0xff]  }
 0x17c   :  { %v3648_v12 = vadd.s32 3, %v833_v40  ;;  %v1343_v38 = vsub.s32 0, %v3639_v35  ;;  %v1192_v15 = vor.u32 %v1191_v16, %v1190_v49  ;;  %v1195_v54 = vor.u32 %v1194_v44, %v1193_v30  ;;  %v3660_v16 = vld [vmem:[%s4018_s4 + $0x1] ss:$0 sm:$0xff]  ;;  %v2539_v49 = vld [vmem:[#allocation8 + $0x40] sm:$0xff]   ;;  %2387 = vmatpush3.bf16.msra.mxu1 %v2542_v37  ;;  %2377 = vmatpush3.bf16.msra.mxu0 %v2538_v50 }
 0x17d   :  { %v827_v41 = vmul.f32 %v826_v10, %v824_v45  ;;  %v1198_v36 = vor.u32 %v1197_v13, %v1196_v31  ;;  %v1201_v57 = vor.u32 %v1200_v17, %v1199_v19  ;;  %v1203_v23 = vshrl.u32 %v2744_v11, %v1188_v18  ;;  %2388 = vmatprep.subr.bf16.mxu1 %v2546_v47  ;;  %v2548_v19 = vld [vmem:[#allocation8 + $0xe8] sm:$0xff]   ;;  %v2557_v37 = vld [vmem:[#allocation8 + $0x178] sm:$0xff]   ;;  %v2561_v45 = vld [vmem:[#allocation8 + $0x170] sm:$0xff]  }
 0x17e   :  { %vm1279_vm0 = vcmp.lt.s32.totalorder %v3402_v33, 0  ;;  %v2276_v2 = vmin.u32 %v1343_v38, %v3639_v35  ;;  %v1202_v40 = vshll.u32 %v2743_v4, %v1187_v42  ;;  %v3655_v0 = vshll.u32 %v1181_v63, 8  ;;  %v2547_v42 = vld [vmem:[#allocation8 + $0xb0] sm:$0xff]   ;;  %2378 = vmatprep.subr.bf16.mxu0 %v2539_v49 }
 0x17f   :  { %v3663_v44 = vadd.f32 %v3660_v16, %v1418_v14  ;;  %v828_v10 = vxor.u32 2147483648, %v827_v41  ;;  %v1363_v30 = vsub.s32 4, %v3622_v22  ;;  %v1189_v13 = vshrl.u32 %v2739_v58, %v1188_v18 }
 0x180   :  { %vm1205_vm9 = vcmp.lt.s32.totalorder %v3636_v9, 1  ;;  %v4050_v63 = vand.u32 2147483647, %v3071_v53  ;;  %v1345_v14 = vclz %v2276_v2  ;;  %v1204_v31 = vor.u32 %v1203_v23, %v1202_v40  ;;  %v2541_v2 = vld [vmem:[#allocation8] sm:$0xff]   ;;  %2389 = vmatpush3.bf16.msra.mxu1 %v2547_v42 }
 0x181   :  { %vm1207_vm4 = vcmp.lt.s32.totalorder %v3636_v9, 3  ;;  %vm1208_vm8 = vcmp.lt.s32.totalorder %v3636_v9, 4  ;;  %v829_v18 = vsel %vm746_vm13, %v828_v10, %v827_v41  ;;  %v1213_v7 = vsel %vm1205_vm9, %v1192_v15, %v1195_v54  ;;  %v2549_v10 = vld [vmem:[#allocation8 + $0xa8] sm:$0xff]   ;;  %2390 = vmatprep.subr.bf16.mxu1 %v2548_v19  ;;  %2379 = vmatpush3.bf16.msra.mxu0 %v2541_v2  ;;  %v2551_v2 = vld [vmem:[#allocation8 + $0xa0] sm:$0xff]  }
 0x182   :  { %vm3670_vm3 = vcmp.le.f32.partialorder %v4050_v63, 0.7853982  ;;  %v1210_v17 = vsel %vm1208_vm8, %v1198_v36, 2102212464  ;;  %v1214_v32 = vsel %vm1208_vm8, %v1201_v57, 920167782  ;;  %v832_v38 = vsel %vm3577_vm14, %v3304_v56, %v829_v18  ;;  %2408 = vmatprep.subr.bf16.mxu0 %v2557_v37 }
 0x183   :  { %v4053_v47 = vand.u32 2147483647, %v3402_v33  ;;  %v2277_v41 = vadd.s32 4294967294, %v1345_v14  ;;  %vm1206_vm13 = vcmp.lt.s32.totalorder %v3636_v9, 2  ;;  %v1215_v23 = vsel %vm1207_vm4, %v1198_v36, %v1214_v32  ;;  %v2550_v14 = vld [vmem:[#allocation8 + $0xe0] sm:$0xff]  }
 0x184   :  { %2604 = vcosq.f32 %v832_v38  ;;  %v1209_v50 = vsel %vm1205_vm9, %v1189_v13, %v1192_v15  ;;  %v1216_v59 = vsel %vm1206_vm13, %v1213_v7, %v1215_v23  ;;  %v1217_v40 = vsel %vm1205_vm9, %v1195_v54, %v1198_v36  ;;  %2391 = vmatpush3.bf16.msra.mxu1 %v2549_v10 }
 0x185   :  { %vm3689_vm6 = vcmp.le.f32.partialorder %v4053_v47, 0.7853982  ;;  %2606 = vsinq.f32 %v832_v38  ;;  %vm2278_vm14 = vcmp.lt.s32.totalorder %v2277_v41, 0  ;;  %v1211_v63 = vsel %vm1207_vm4, %v1195_v54, %v1210_v17  ;;  %2392 = vmatprep.subr.bf16.mxu1 %v2550_v14 }
 0x186   :  { %v1218_v49 = vsel %vm1208_vm8, %v1204_v31, 1326507024  ;;  %v1348_v18 = vsel %vm2278_vm14, 0, %v2277_v41  ;;  %v3709_v13 = vmul.u32.u64.low %v3655_v0, %v1216_v59  ;;  %v3710_v7 = vmul.u32.u64.high %v3655_v0, %v1216_v59, %v3709_v13  ;;  %v2552_v41 = vld [vmem:[#allocation8 + $0xd8] sm:$0xff]  }
 0x187   :  { %v1219_v15 = vsel %vm1207_vm4, %v1201_v57, %v1218_v49  ;;  %v1333_v36 = vadd.s32 %v3557_v8, %v3573_v21  ;;  %v1349_v42 = vsub.s32 32, %v1348_v18  ;;  %v1353_v54 = vsub.s32 4294967266, %v1348_v18  ;;  %v2554_v49 = vld [vmem:[#allocation8 + $0xd0] sm:$0xff]  }
 0x188   :  { %v1220_v31 = vsel %vm1206_vm13, %v1217_v40, %v1219_v15  ;;  %v1364_v19 = vsel %vm1279_vm0, %v1363_v30, %v3622_v22  ;;  %v1430_v32 = vand.u32 2139095040, %v3663_v44  ;;  %v1350_v8 = vshll.u32 %v3639_v35, %v1348_v18  ;;  %2393 = vmatpush3.bf16.msra.mxu1 %v2551_v2 }
 0x189   :  { %v3721_v57 = vmul.u32.u64.low %v3655_v0, %v1220_v31  ;;  %v3722_v17 = vmul.u32.u64.high %v3655_v0, %v1220_v31, %v3721_v57  ;;  %v1351_v21 = vshrl.u32 %v1333_v36, %v1349_v42  ;;  %v1354_v38 = vadd.s32 127, %v1353_v54  ;;  %2394 = vmatprep.subr.bf16.mxu1 %v2552_v41  ;;  %v2555_v54 = vld [vmem:[#allocation8 + $0x90] sm:$0xff]  }
 0x18a   :  { %v1212_v47 = vsel %vm1206_vm13, %v1209_v50, %v1211_v63  ;;  %v3732_v22 = vsel %vm3670_vm3, %v3071_v53, %v3593_v5  ;;  %v1231_v30 = vadd.s32 1, %v3710_v7  ;;  %v1431_v23 = vshrl.u32 %v1430_v32, 23  ;;  %v2553_v63 = vld [vmem:[#allocation8 + $0x98] sm:$0xff]   ;;  %v2556_v32 = vld [vmem:[#allocation8 + $0xc8] sm:$0xff]  }
 0x18b   :  { %v1419_v37 = vmul.f32 %v3611_v48, %v3626_v24  ;;  %v838_v35 = vand.u32 3, %v3648_v12  ;;  %v1352_v59 = vor.u32 %v1351_v21, %v1350_v8  ;;  %v1355_v40 = vshll.u32 %v1354_v38, 23 }
 0x18c   :  { %v1427_v9 = vand.u32 2147483647, %v3663_v44  ;;  %v1366_v50 = vsel %vm3689_vm6, 0, %v1364_v19  ;;  %v1228_v10 = vmul.u32 %v3655_v0, %v1212_v47  ;;  %vm1230_vm11 = vc.u32 %v3722_v17, %v3709_v13  ;;  %2395 = vmatpush3.bf16.msra.mxu1 %v2553_v63 }
 0x18d   :  { %v2283_v5 = vadd.s32 4294967169, %v1431_v23  ;;  %2608 = vsinq.f32 %v3565_v39  ;;  %v1356_v48 = vor.u32 4788187, %v1355_v40  ;;  %v1232_v24 = vsel %vm1230_vm11, %v1231_v30, %v3710_v7  ;;  %2396 = vmatprep.subr.bf16.mxu1 %v2554_v49 }
 0x18e   :  { %v201_v12 = vsub.s32 4, %v2890_v29  ;;  %2610 = vcosq.f32 %v3732_v22  ;;  %vm836_vm12 = vweird.f32 %v3304_v56  ;;  %v1233_v0 = vadd.s32 %v1232_v24, %v1228_v10  ;;  %v2558_v10 = vld [vmem:[#allocation8 + $0x88] sm:$0xff]  }
 0x18f   :  { %v1437_v14 = vadd.s32 1, %v2283_v5  ;;  %v3750_v18 = vadd.f32 %v3660_v16, %v1419_v37  ;;  %v1357_v15 = vand.u32 2147483647, %v1356_v48  ;;  %v1359_v36 = vcvt.s32.f32 %v1352_v59 }
 0x190   :  { %v1370_v42 = vadd.s32 3, %v1366_v50  ;;  %v1434_v39 = vand.u32 8388607, %v1427_v9  ;;  %vm839_vm9 = vcmp.lt.s32.totalorder %v838_v35, 2  ;;  %vm840_vm4 = vcmp.eq.s32.totalorder %v838_v35, 0  ;;  %2397 = vmatpush3.bf16.msra.mxu1 %v2555_v54  ;;  %v2562_v54 = vld [vmem:[#allocation8 + $0x80] sm:$0xff]  }
 0x191   :  { %v1234_v7 = vadd.s32 536870912, %v1233_v0  ;;  %vm1438_vm8 = vcmp.gt.s32.totalorder %v1437_v14, 0  ;;  %v2605_v31 = vpop.eup %2604  ;;  %vm843_vm13 = vcmp.eq.s32.totalorder %v838_v35, 2  ;;  %v1360_v19 = vmul.f32 %v1359_v36, %v1357_v15  ;;  %2398 = vmatprep.subr.bf16.mxu1 %v2556_v32 }
 0x192   :  { %v1439_v57 = vsel %vm1438_vm8, %v1437_v14, 0  ;;  %v3757_v16 = vsel %vm117_vm10, %v201_v12, %v2890_v29  ;;  %v2607_v2 = vpop.eup %2606  ;;  %v844_v8 = vxor.u32 2147483648, %v2605_v31  ;;  %v1534_v47 = vand.u32 2139095040, %v3750_v18  ;;  %v2560_v12 = vld [vmem:[#allocation8 + $0xc0] sm:$0xff]  }
 0x193   :  { %v1235_v21 = vshrl.u32 %v1234_v7, 30  ;;  %v1441_v38 = vand.u32 31, %v1439_v57  ;;  %v841_v41 = vxor.u32 2147483648, %v2607_v2  ;;  %v1361_v30 = vxor.u32 2147483648, %v1360_v19 }
 0x194   :  { %v3760_v23 = vand.u32 3, %v1370_v42  ;;  %vm1175_vm14 = vcmp.lt.s32.totalorder %v3499_v55, 0  ;;  %v1435_v37 = vor.u32 8388608, %v1434_v39  ;;  %v845_v59 = vsel %vm843_vm13, %v844_v8, %v2607_v2  ;;  %2399 = vmatpush3.bf16.msra.mxu1 %v2558_v10 }
 0x195   :  { %v3766_v29 = vadd.s32 %v3709_v13, %v3722_v17  ;;  %v1236_v40 = vshll.u32 %v1235_v21, 30  ;;  %v204_v50 = vsel %vm3374_vm1, 0, %v3757_v16  ;;  %v842_v5 = vsel %vm840_vm4, %v2605_v31, %v841_v41  ;;  %2400 = vmatprep.subr.bf16.mxu1 %v2560_v12 }
 0x196   :  { %v1362_v63 = vsel %vm1279_vm0, %v1361_v30, %v1360_v19  ;;  %v1442_v48 = vsub.s32 32, %v1441_v38  ;;  %v1531_v24 = vand.u32 2147483647, %v3750_v18  ;;  %v846_v13 = vsel %vm839_vm9, %v842_v5, %v845_v59 }
 0x197   :  { %v1365_v17 = vsel %vm3689_vm6, %v3402_v33, %v1362_v63  ;;  %v3779_v49 = vsub.s32 %v1233_v0, %v1236_v40  ;;  %v1535_v14 = vshrl.u32 %v1534_v47, 23  ;;  %v847_v15 = vsel %vm836_vm12, nan, %v846_v13 }
 0x198   :  { %2612 = vcosq.f32 %v1365_v17  ;;  %v1259_v36 = vsub.s32 4, %v1235_v21  ;;  %v1444_v42 = vshll.u32 %v2739_v58, %v1441_v38  ;;  %v2355_v39 = vpack.c.bf16 %v847_v15, %v847_v15  ;;  %2401 = vmatpush3.bf16.msra.mxu1 %v2562_v54 }
 0x199   :  { %2614 = vsinq.f32 %v1365_v17  ;;  %v1239_v7 = vsub.s32 0, %v3779_v49  ;;  %v1447_v35 = vshll.u32 %v2740_v62, %v1441_v38  ;;  %v1445_v43 = vshrl.u32 %v2740_v62, %v1442_v48 }
 0x19a   :  { %v4056_v0 = vmov 2131351028   ;;  %v4057_v56 = vmov 2102212464   ;;  %v3790_v2 = vpop.eup %2608  ;;  %857 = vst [vmem:[#allocation2 + $0x20] sm:$0xf] %v2355_v39  ;;  %v1454_v41 = vshrl.u32 %v2743_v4, %v1442_v48  ;;  %vm1369_vm13 = vweird.f32 %v3402_v33 }
 0x19b   :  { %v1448_v31 = vshrl.u32 %v4056_v0, %v1442_v48  ;;  %v1450_v19 = vshll.u32 %v4056_v0, %v1441_v38  ;;  %v1451_v32 = vshrl.u32 %v4057_v56, %v1442_v48  ;;  %v2272_v8 = vmin.u32 %v1239_v7, %v3779_v49  ;;  %v3796_v59 = vpop.eup %2610 }
 0x19c   :  { %v1440_v47 = vshrl.u32 %v1439_v57, 5  ;;  %v3794_v30 = vshll.u32 %v1435_v37, 8  ;;  %v1446_v40 = vor.u32 %v1445_v43, %v1444_v42  ;;  %v1453_v63 = vshll.u32 %v4057_v56, %v1441_v38 }
 0x19d   :  { %v1449_v10 = vor.u32 %v1448_v31, %v1447_v35  ;;  %v1452_v5 = vor.u32 %v1451_v32, %v1450_v19  ;;  %v4058_v13 = vand.u32 2147483647, %v3499_v55  ;;  %v1241_v17 = vclz %v2272_v8 }
 0x19e   :  { %v1260_v57 = vsel %vm1175_vm14, %v1259_v36, %v1235_v21  ;;  %v2287_v15 = vadd.s32 4294967169, %v1535_v14  ;;  %v3809_v37 = vand.u32 8388607, %v1531_v24  ;;  %v1443_v42 = vshrl.u32 %v2739_v58, %v1442_v48 }
 0x19f   :  { %vm3801_vm10 = vcmp.le.f32.partialorder %v4058_v13, 0.7853982  ;;  %v1455_v39 = vor.u32 %v1454_v41, %v1453_v63  ;;  %v1456_v7 = vshll.u32 %v2743_v4, %v1441_v38  ;;  %v1457_v35 = vshrl.u32 %v2744_v11, %v1442_v48 }
 0x1a0   :  { %v2273_v43 = vadd.s32 4294967294, %v1241_v17  ;;  %vm1459_vm0 = vcmp.lt.s32.totalorder %v1440_v47, 1  ;;  %vm1461_vm6 = vcmp.lt.s32.totalorder %v1440_v47, 3  ;;  %vm1462_vm11 = vcmp.lt.s32.totalorder %v1440_v47, 4 }
 0x1a1   :  { %vm1373_vm12 = vcmp.eq.s32.totalorder %v3760_v23, 0  ;;  %v1458_v21 = vor.u32 %v1457_v35, %v1456_v7  ;;  %v1464_v14 = vsel %vm1462_vm11, %v1452_v5, 2102212464  ;;  %v1467_v36 = vsel %vm1459_vm0, %v1446_v40, %v1449_v10 }
 0x1a2   :  { %v1468_v31 = vsel %vm1462_vm11, %v1455_v39, 920167782  ;;  %vm1372_vm9 = vcmp.lt.s32.totalorder %v3760_v23, 2  ;;  %vm2274_vm4 = vcmp.lt.s32.totalorder %v2273_v43, 0  ;;  %vm1460_vm8 = vcmp.lt.s32.totalorder %v1440_v47, 2 }
 0x1a3   :  { %v1469_v54 = vsel %vm1461_vm6, %v1452_v5, %v1468_v31  ;;  %v1471_v19 = vsel %vm1459_vm0, %v1449_v10, %v1452_v5  ;;  %v1244_v38 = vsel %vm2274_vm4, 0, %v2273_v43  ;;  %v1463_v48 = vsel %vm1459_vm0, %v1443_v42, %v1446_v40 }
 0x1a4   :  { %v1470_v32 = vsel %vm1460_vm8, %v1467_v36, %v1469_v54  ;;  %v1472_v8 = vsel %vm1462_vm11, %v1458_v21, 1326507024  ;;  %v1245_v41 = vsub.s32 32, %v1244_v38  ;;  %v1249_v63 = vsub.s32 4294967266, %v1244_v38 }
 0x1a5   :  { %v1465_v13 = vsel %vm1461_vm6, %v1449_v10, %v1464_v14  ;;  %v1473_v17 = vsel %vm1461_vm6, %v1455_v39, %v1472_v8  ;;  %v1246_v7 = vshll.u32 %v3779_v49, %v1244_v38  ;;  %v2613_v43 = vpop.eup %2612  ;;  %vm1376_vm0 = vcmp.eq.s32.totalorder %v3760_v23, 2 }
 0x1a6   :  { %v1474_v35 = vsel %vm1460_vm8, %v1471_v19, %v1473_v17  ;;  %v3824_v31 = vmul.u32.u64.low %v3794_v30, %v1470_v32  ;;  %v3825_v5 = vmul.u32.u64.high %v3794_v30, %v1470_v32, %v3824_v31  ;;  %v1247_v40 = vshrl.u32 %v3766_v29, %v1245_v41  ;;  %v2615_v10 = vpop.eup %2614 }
 0x1a7   :  { %v1250_v42 = vadd.s32 127, %v1249_v63  ;;  %v3830_v21 = vmul.u32.u64.low %v3794_v30, %v1474_v35  ;;  %v3831_v36 = vmul.u32.u64.high %v3794_v30, %v1474_v35, %v3830_v21  ;;  %v1377_v39 = vxor.u32 2147483648, %v2613_v43 }
 0x1a8   :  { %v1262_v49 = vsel %vm3801_vm10, 0, %v1260_v57  ;;  %v1541_v14 = vadd.s32 1, %v2287_v15  ;;  %v1374_v54 = vxor.u32 2147483648, %v2615_v10  ;;  %v1248_v19 = vor.u32 %v1247_v40, %v1246_v7 }
 0x1a9   :  { %v1251_v38 = vshll.u32 %v1250_v42, 23  ;;  %v1466_v32 = vsel %vm1460_vm8, %v1463_v48, %v1465_v13  ;;  %v1378_v8 = vsel %vm1376_vm0, %v1377_v39, %v2615_v10  ;;  %v1485_v29 = vadd.s32 1, %v3825_v5 }
 0x1aa   :  { %vm1542_vm6 = vcmp.gt.s32.totalorder %v1541_v14, 0  ;;  %v208_v41 = vadd.s32 3, %v204_v50  ;;  %v1375_v63 = vsel %vm1373_vm12, %v2613_v43, %v1374_v54  ;;  %v1266_v57 = vadd.s32 3, %v1262_v49 }
 0x1ab   :  { %v1252_v17 = vor.u32 4788187, %v1251_v38  ;;  %v1539_v15 = vor.u32 8388608, %v3809_v37  ;;  %v1379_v47 = vsel %vm1372_vm9, %v1375_v63, %v1378_v8  ;;  %v1482_v48 = vmul.u32 %v3794_v30, %v1466_v32 }
 0x1ac   :  { %vm1484_vm11 = vc.u32 %v3831_v36, %v3824_v31  ;;  %v1543_v13 = vsel %vm1542_vm6, %v1541_v14, 0  ;;  %v1380_v25 = vsel %vm1369_vm13, nan, %v1379_v47  ;;  %v1255_v50 = vcvt.s32.f32 %v1248_v19 }
 0x1ad   :  { %v1253_v16 = vand.u32 2147483647, %v1252_v17  ;;  %v1486_v7 = vsel %vm1484_vm11, %v1485_v29, %v3825_v5  ;;  %2616 = vsinq.f32 %v3732_v22  ;;  %v2361_v35 = vpack.c.bf16 %v1380_v25, %v1380_v25 }
 0x1ae   :  { %v1487_v37 = vadd.s32 %v1486_v7, %v1482_v48  ;;  %v1545_v43 = vand.u32 31, %v1543_v13  ;;  %v3854_v40 = vand.u32 3, %v1266_v57  ;;  %v3856_v30 = vshll.u32 %v1539_v15, 8 }
 0x1af   :  { %v1256_v23 = vmul.f32 %v1255_v50, %v1253_v16  ;;  %v3858_v42 = vand.u32 3, %v208_v41  ;;  %1390 = vst [vmem:[#allocation2 + $0x28] sm:$0xf] %v2361_v35  ;;  %v1544_v33 = vshrl.u32 %v1543_v13, 5  ;;  %v212_v39 = vxor.u32 2147483648, %v3457_v52 }
 0x1b0   :  { %v1488_v21 = vadd.s32 536870912, %v1487_v37  ;;  %v1546_v10 = vsub.s32 32, %v1545_v43  ;;  %v1548_v5 = vshll.u32 %v2739_v58, %v1545_v43  ;;  %v1551_v22 = vshll.u32 %v2740_v62, %v1545_v43 }
 0x1b1   :  { %v1257_v49 = vxor.u32 2147483648, %v1256_v23  ;;  %v1554_v14 = vshll.u32 %v4056_v0, %v1545_v43  ;;  %v1557_v32 = vshll.u32 %v4057_v56, %v1545_v43  ;;  %vm1563_vm1 = vcmp.lt.s32.totalorder %v1544_v33, 1 }
 0x1b2   :  { %v3864_v54 = vshrl.u32 %v1488_v21, 30  ;;  %v1549_v19 = vshrl.u32 %v2740_v62, %v1546_v10  ;;  %v1552_v38 = vshrl.u32 %v4056_v0, %v1546_v10  ;;  %v1555_v29 = vshrl.u32 %v4057_v56, %v1546_v10 }
 0x1b3   :  { %v1258_v8 = vsel %vm1175_vm14, %v1257_v49, %v1256_v23  ;;  %v1558_v41 = vshrl.u32 %v2743_v4, %v1546_v10  ;;  %v1561_v63 = vshrl.u32 %v2744_v11, %v1546_v10  ;;  %v1560_v0 = vshll.u32 %v2743_v4, %v1545_v43 }
 0x1b4   :  { %v1261_v17 = vsel %vm3801_vm10, %v3499_v55, %v1258_v8  ;;  %v1490_v57 = vshll.u32 %v3864_v54, 30  ;;  %v1550_v62 = vor.u32 %v1549_v19, %v1548_v5  ;;  %v1553_v15 = vor.u32 %v1552_v38, %v1551_v22 }
 0x1b5   :  { %2618 = vcosq.f32 %v1261_v17  ;;  %v1556_v47 = vor.u32 %v1555_v29, %v1554_v14  ;;  %v1559_v48 = vor.u32 %v1558_v41, %v1557_v32  ;;  %v1562_v56 = vor.u32 %v1561_v63, %v1560_v0  ;;  %v342_v0 = vpop.permute.xlu1 %341 }
 0x1b6   :  { %2620 = vsinq.f32 %v1261_v17  ;;  %v3879_v13 = vsub.s32 %v1487_v37, %v1490_v57  ;;  %v1547_v11 = vshrl.u32 %v2739_v58, %v1546_v10  ;;  %vm1564_vm14 = vcmp.lt.s32.totalorder %v1544_v33, 2 }
 0x1b7   :  { %vm1566_vm12 = vcmp.lt.s32.totalorder %v1544_v33, 4  ;;  %v1571_v12 = vsel %vm1563_vm1, %v1550_v62, %v1553_v15  ;;  %vm207_vm10 = vweird.f32 %v2810_v26  ;;  %vm1565_vm9 = vcmp.lt.s32.totalorder %v1544_v33, 3 }
 0x1b8   :  { %v1493_v25 = vsub.s32 0, %v3879_v13  ;;  %v1568_v4 = vsel %vm1566_vm12, %v1556_v47, 2102212464  ;;  %v1572_v16 = vsel %vm1566_vm12, %v1559_v48, 920167782  ;;  %v1567_v50 = vsel %vm1563_vm1, %v1547_v11, %v1550_v62 }
 0x1b9   :  { %v1569_v7 = vsel %vm1565_vm9, %v1553_v15, %v1568_v4  ;;  %v1573_v35 = vsel %vm1565_vm9, %v1556_v47, %v1572_v16  ;;  %v1576_v37 = vsel %vm1566_vm12, %v1562_v56, 1326507024  ;;  %vm347_vm4 = vcmask 814848  }
 0x1ba   :  { %v2284_v43 = vmin.u32 %v1493_v25, %v3879_v13  ;;  %v1574_v58 = vsel %vm1564_vm14, %v1571_v12, %v1573_v35  ;;  %v1575_v23 = vsel %vm1563_vm1, %v1553_v15, %v1556_v47  ;;  %v215_v21 = vxor.u32 2147483648, %v3452_v3  ;;  %v3890_v10 = vpop.eup %2616 }
 0x1bb   :  { %v1577_v49 = vsel %vm1565_vm9, %v1559_v48, %v1576_v37  ;;  %v3893_v5 = vmul.u32.u64.low %v3856_v30, %v1574_v58  ;;  %v3894_v22 = vmul.u32.u64.high %v3856_v30, %v1574_v58, %v3893_v5  ;;  %vm211_vm8 = vcmp.eq.s32.totalorder %v3858_v42, 0 }
 0x1bc   :  { %vm1272_vm13 = vcmp.eq.s32.totalorder %v3854_v40, 2  ;;  %v1495_v14 = vclz %v2284_v43  ;;  %v1570_v19 = vsel %vm1564_vm14, %v1567_v50, %v1569_v7  ;;  %vm210_vm0 = vcmp.lt.s32.totalorder %v3858_v42, 2 }
 0x1bd   :  { %v213_v38 = vsel %vm211_vm8, %v3452_v3, %v212_v39  ;;  %v1483_v32 = vadd.s32 %v3824_v31, %v3831_v36  ;;  %v1578_v8 = vsel %vm1564_vm14, %v1575_v23, %v1577_v49  ;;  %vm214_vm6 = vcmp.eq.s32.totalorder %v3858_v42, 2 }
 0x1be   :  { %v305_v29 = vsub.s32 4, %v2916_v6  ;;  %vm1268_vm11 = vcmp.lt.s32.totalorder %v3854_v40, 2  ;;  %v2285_v41 = vadd.s32 4294967294, %v1495_v14  ;;  %v216_v57 = vsel %vm214_vm6, %v215_v21, %v3457_v52 }
 0x1bf   :  { %v3909_v63 = vmul.u32.u64.low %v3856_v30, %v1578_v8  ;;  %v3910_v17 = vmul.u32.u64.high %v3856_v30, %v1578_v8, %v3909_v63  ;;  %vm1265_vm1 = vweird.f32 %v3499_v55  ;;  %v1586_v3 = vmul.u32 %v3856_v30, %v1570_v19 }
 0x1c0   :  { %v1589_v31 = vadd.s32 1, %v3894_v22  ;;  %v217_v36 = vsel %vm210_vm0, %v213_v38, %v216_v57  ;;  %v306_v42 = vsel %vm221_vm15, %v305_v29, %v2916_v6  ;;  %vm2286_vm14 = vcmp.lt.s32.totalorder %v2285_v41, 0 }
 0x1c1   :  { %v218_v33 = vsel %vm207_vm10, nan, %v217_v36  ;;  %v308_v39 = vsel %vm3380_vm2, 0, %v306_v42  ;;  %v316_v52 = vxor.u32 2147483648, %v3472_v61  ;;  %v1498_v62 = vsel %vm2286_vm14, 0, %v2285_v41 }
 0x1c2   :  { %v2348_v15 = vpack.c.bf16 %v218_v33, %v218_v33  ;;  %v312_v30 = vadd.s32 3, %v308_v39  ;;  %v989_v47 = vsub.s32 4, %v3200_v1  ;;  %v2619_v48 = vpop.eup %2618  ;;  %v1499_v56 = vsub.s32 32, %v1498_v62 }
 0x1c3   :  { %v1500_v11 = vshll.u32 %v3879_v13, %v1498_v62  ;;  %v1503_v6 = vsub.s32 4294967266, %v1498_v62  ;;  %v319_v12 = vxor.u32 2147483648, %v3459_v46  ;;  %v2621_v26 = vpop.eup %2620  ;;  %v1273_v25 = vxor.u32 2147483648, %v2619_v48 }
 0x1c4   :  { %vm1588_vm15 = vc.u32 %v3910_v17, %v3893_v5  ;;  %331 = vst [vmem:[#allocation2] sm:$0xf] %v2348_v15  ;;  %v313_v28 = vand.u32 3, %v312_v30  ;;  %vm4061_vm2 = vcmp.lt.s32.totalorder %v2991_v27, 0  ;;  %v1270_v16 = vxor.u32 2147483648, %v2621_v26 }
 0x1c5   :  { %v990_v4 = vsel %vm4061_vm2, %v989_v47, %v3200_v1  ;;  %v1501_v50 = vshrl.u32 %v1483_v32, %v1499_v56  ;;  %v1504_v7 = vadd.s32 127, %v1503_v6  ;;  %v1590_v35 = vsel %vm1588_vm15, %v1589_v31, %v3894_v22  ;;  %348 = vst.msk [vmem:[#allocation2] sm:$0xf] %vm347_vm4, %v342_v0 }
 0x1c6   :  { %vm1269_vm12 = vcmp.eq.s32.totalorder %v3854_v40, 0  ;;  %v1274_v13 = vsel %vm1272_vm13, %v1273_v25, %v2621_v26  ;;  %v1591_v37 = vadd.s32 %v1590_v35, %v1586_v3  ;;  %vm315_vm10 = vcmp.eq.s32.totalorder %v313_v28, 0  ;;  %v344_v3 = vpop.permute.xlu0 %343 }
 0x1c7   :  { %v1271_v43 = vsel %vm1269_vm12, %v2619_v48, %v1270_v16  ;;  %v1502_v58 = vor.u32 %v1501_v50, %v1500_v11  ;;  %v1505_v23 = vshll.u32 %v1504_v7, 23  ;;  %v317_v21 = vsel %vm315_vm10, %v3459_v46, %v316_v52 }
 0x1c8   :  { %v1275_v1 = vsel %vm1268_vm11, %v1271_v43, %v1274_v13  ;;  %v1592_v49 = vadd.s32 536870912, %v1591_v37  ;;  %vm318_vm9 = vcmp.eq.s32.totalorder %v313_v28, 2  ;;  %v992_v22 = vsel %vm3529_vm5, 0, %v990_v4 }
 0x1c9   :  { %v1276_v14 = vsel %vm1265_vm1, nan, %v1275_v1  ;;  %v1506_v19 = vor.u32 4788187, %v1505_v23  ;;  %vm314_vm8 = vcmp.lt.s32.totalorder %v313_v28, 2  ;;  %v320_v38 = vsel %vm318_vm9, %v319_v12, %v3472_v61  ;;  %v2559_v28 = vld [vmem:[#allocation8 + $0x138] sm:$0xff]  }
 0x1ca   :  { %v2360_v32 = vpack.c.bf16 %v1276_v14, %v1276_v14  ;;  %v3945_v8 = vshrl.u32 %v1592_v49, 30  ;;  %vm311_vm13 = vweird.f32 %v2817_v34  ;;  %v321_v46 = vsel %vm314_vm8, %v317_v21, %v320_v38  ;;  %v2563_v21 = vld [vmem:[#allocation8 + $0x130] sm:$0xff]   ;;  %v2567_v49 = vld [vmem:[#allocation8 + $0x168] sm:$0xff]  }
 0x1cb   :  { %v1507_v40 = vand.u32 2147483647, %v1506_v19  ;;  %v1509_v29 = vcvt.s32.f32 %v1502_v58  ;;  %v322_v41 = vsel %vm311_vm13, nan, %v321_v46  ;;  %v996_v63 = vadd.s32 3, %v992_v22 }
 0x1cc   :  { %1389 = vst [vmem:[#allocation2 + $0x10] sm:$0xf] %v2360_v32  ;;  %v1513_v20 = vsub.s32 4, %v3864_v54  ;;  %v1594_v55 = vshll.u32 %v3945_v8, 30  ;;  %v2349_v57 = vpack.c.bf16 %v322_v41, %v322_v41  ;;  %v1000_v31 = vxor.u32 2147483648, %v3790_v2 }
 0x1cd   :  { %v1510_v61 = vmul.f32 %v1509_v29, %v1507_v40  ;;  %v997_v36 = vand.u32 3, %v996_v63  ;;  %v1003_v42 = vxor.u32 2147483648, %v3643_v60  ;;  %v1093_v34 = vsub.s32 4, %v3295_v51  ;;  %v1132_v40 = vpop.permute.xlu0 %1131  ;;  %v2568_v29 = vld [vmem:[#allocation8 + $0x128] sm:$0xff]  }
 0x1ce   :  { %v3953_v33 = vsub.s32 %v1591_v37, %v1594_v55  ;;  %332 = vst [vmem:[#allocation2 + $0x18] sm:$0xf] %v2349_v57  ;;  %vm3957_vm5 = vcmp.le.f32.partialorder %v1427_v9, 0.7853982  ;;  %vm1429_vm0 = vcmp.lt.s32.totalorder %v3663_v44, 0  ;;  %vm995_vm14 = vweird.f32 %v2991_v27 }
 0x1cf   :  { %v1511_v52 = vxor.u32 2147483648, %v1510_v61  ;;  %349 = vst.msk [vmem:[#allocation2 + $0x18] sm:$0xf] %vm347_vm4, %v344_v3  ;;  %vm999_vm6 = vcmp.eq.s32.totalorder %v997_v36, 0  ;;  %v1514_v62 = vsel %vm1429_vm0, %v1513_v20, %v3864_v54  ;;  %vm1002_vm11 = vcmp.eq.s32.totalorder %v997_v36, 2 }
 0x1d0   :  { %v1597_v0 = vsub.s32 0, %v3953_v33  ;;  %v1001_v15 = vsel %vm999_vm6, %v3643_v60, %v1000_v31  ;;  %vm998_vm1 = vcmp.lt.s32.totalorder %v997_v36, 2  ;;  %v1004_v9 = vsel %vm1002_vm11, %v1003_v42, %v3790_v2  ;;  %v2545_v27 = vld [vmem:[#allocation2 + $0x4] ss:$24 sps:$4 sm:$0xff]  }
 0x1d1   :  { %v1512_v30 = vsel %vm1429_vm0, %v1511_v52, %v1510_v61  ;;  %v1094_v47 = vsel %vm1009_vm7, %v1093_v34, %v3295_v51  ;;  %v1005_v54 = vsel %vm998_vm1, %v1001_v15, %v1004_v9  ;;  %v1516_v6 = vsel %vm3957_vm5, 0, %v1514_v62  ;;  %v1130_v51 = vpop.permute.xlu1 %1129  ;;  %2104 = vmatprep.mubr.bf16.mxu0 %v2545_v27  ;;  %v2570_v31 = vld [vmem:[#allocation8 + $0x120] sm:$0xff]   ;;  %v2571_v36 = vld [vmem:[#allocation8 + $0x158] sm:$0xff]   ;;  %v2573_v9 = vld [vmem:[#allocation8 + $0x150] sm:$0xff]  }
 0x1d2   :  { %v1515_v48 = vsel %vm3957_vm5, %v3663_v44, %v1512_v30  ;;  %v2288_v56 = vmin.u32 %v1597_v0, %v3953_v33  ;;  %v1006_v60 = vsel %vm995_vm14, nan, %v1005_v54  ;;  %v1096_v11 = vsel %vm3670_vm3, 0, %v1094_v47  ;;  %v2572_v62 = vld [vmem:[#allocation8 + $0x118] sm:$0xff]  }
 0x1d3   :  { %2622 = vcosq.f32 %v1515_v48  ;;  %v2356_v12 = vpack.c.bf16 %v1006_v60, %v1006_v60  ;;  %v1100_v26 = vadd.s32 3, %v1096_v11  ;;  %v1104_v25 = vxor.u32 2147483648, %v3890_v10  ;;  %v2575_v60 = vld [vmem:[#allocation8 + $0x148] sm:$0xff]  }
 0x1d4   :  { %2624 = vsinq.f32 %v1515_v48  ;;  %v1599_v2 = vclz %v2288_v56  ;;  %v1107_v7 = vxor.u32 2147483648, %v3796_v59  ;;  %v1520_v35 = vadd.s32 3, %v1516_v6  ;;  %v2577_v6 = vld [vmem:[#allocation8 + $0x140] sm:$0xff]  }
 0x1d5   :  { %1119 = vst [vmem:[#allocation2 + $0xc] sm:$0xf] %v2356_v12  ;;  %v1101_v50 = vand.u32 3, %v1100_v26  ;;  %v1587_v13 = vadd.s32 %v3893_v5, %v3910_v17  ;;  %vm1099_vm2 = vweird.f32 %v3071_v53  ;;  %v2569_v53 = vld [vmem:[#allocation8 + $0x160] sm:$0xff]   ;;  %vm1519_vm13 = vweird.f32 %v3663_v44 }
 0x1d6   :  { %v2289_v4 = vadd.s32 4294967294, %v1599_v2  ;;  %v2543_v16 = vld [vmem:[#allocation2] ss:$24 sps:$4 sm:$0xff]   ;;  %1135 = vst.msk [vmem:[#allocation2 + $0xc] sm:$0xf] %vm347_vm4, %v1130_v51  ;;  %v1521_v38 = vand.u32 3, %v1520_v35  ;;  %vm1623_vm1 = vweird.f32 %v3750_v18 }
 0x1d7   :  { %2105 = vmatmul.mubr.bf16.vlgmr.msra.gmra.mxu0 %v2543_v16  ;;  %vm1103_vm3 = vcmp.eq.s32.totalorder %v1101_v50, 0  ;;  %vm1106_vm15 = vcmp.eq.s32.totalorder %v1101_v50, 2  ;;  %vm1102_vm12 = vcmp.lt.s32.totalorder %v1101_v50, 2  ;;  %vm1533_vm5 = vcmp.lt.s32.totalorder %v3750_v18, 0  ;;  %v2564_v44 = vld [vmem:[#allocation2 + $0x8] ss:$24 sps:$4 sm:$0xff]  }
 0x1d8   :  { %vm2290_vm7 = vcmp.lt.s32.totalorder %v2289_v4, 0  ;;  %v1105_v23 = vsel %vm1103_vm3, %v3796_v59, %v1104_v25  ;;  %2409 = vmatpush3.bf16.msra.mxu0 %v2559_v28  ;;  %v1108_v1 = vsel %vm1106_vm15, %v1107_v7, %v3890_v10  ;;  %vm1526_vm10 = vcmp.eq.s32.totalorder %v1521_v38, 2  ;;  %v2576_v2 = vld [vmem:[#allocation8 + $0x108] sm:$0xff]   ;;  %v2578_v12 = vld [vmem:[#allocation8 + $0x100] sm:$0xff]  }
 0x1d9   :  { %v1602_v37 = vsel %vm2290_vm7, 0, %v2289_v4  ;;  %2410 = vmatprep.subr.bf16.mxu0 %v2561_v45  ;;  %v1109_v14 = vsel %vm1102_vm12, %v1105_v23, %v1108_v1  ;;  %vm1523_vm9 = vcmp.eq.s32.totalorder %v1521_v38, 0  ;;  %vm1522_vm8 = vcmp.lt.s32.totalorder %v1521_v38, 2  ;;  %v2579_v35 = vld [vmem:[#allocation2 + $0x10] ss:$24 sps:$4 sm:$0xff]  }
 0x1da   :  { %v1603_v43 = vsub.s32 32, %v1602_v37  ;;  %v1607_v58 = vsub.s32 4294967266, %v1602_v37  ;;  %v1604_v22 = vshll.u32 %v3953_v33, %v1602_v37  ;;  %v1110_v19 = vsel %vm1099_vm2, nan, %v1109_v14 }
 0x1db   :  { %v2357_v59 = vpack.c.bf16 %v1110_v19, %v1110_v19  ;;  %v1617_v30 = vsub.s32 4, %v3945_v8 }
 0x1dc   :  { %v1605_v5 = vshrl.u32 %v1587_v13, %v1603_v43  ;;  %v1608_v17 = vadd.s32 127, %v1607_v58  ;;  %2411 = vmatpush3.bf16.msra.mxu0 %v2563_v21 }
 0x1dd   :  { %2412 = vmatprep.subr.bf16.mxu0 %v2567_v49  ;;  %1120 = vst [vmem:[#allocation2 + $0x24] sm:$0xf] %v2357_v59  ;;  %v1618_v54 = vsel %vm1533_vm5, %v1617_v30, %v3945_v8 }
 0x1de   :  { %v1606_v32 = vor.u32 %v1605_v5, %v1604_v22  ;;  %v1609_v46 = vshll.u32 %v1608_v17, 23  ;;  %1136 = vst.msk [vmem:[#allocation2 + $0x24] sm:$0xf] %vm347_vm4, %v1132_v40  ;;  %vm3992_vm4 = vcmp.le.f32.partialorder %v1531_v24, 0.7853982  ;;  %v2574_v24 = vld [vmem:[#allocation8 + $0x110] sm:$0xff]  }
 0x1df   :  { %v1620_v11 = vsel %vm3992_vm4, 0, %v1618_v54  ;;  %v2293_v22 = vld [vmem:[%s4020_s6] ss:$0 sm:$0xff]  ;;  %s2692_s6 = scalar_lea.vmem %s2203_s15, 256 }
 0x1e0   :  { %v2623_v41 = vpop.eup %2622  ;;  %v1610_v63 = vor.u32 4788187, %v1609_v46  ;;  %v1613_v3 = vcvt.s32.f32 %v1606_v32  ;;  %2413 = vmatpush3.bf16.msra.mxu0 %v2568_v29  ;;  %v1624_v51 = vadd.s32 3, %v1620_v11  ;;  %p2693_p1 = scmp.ne.s32.totalorder %s2203_s15, %s2692_s6  ;;  %p2698_p3 = scmp.lt.s32.totalorder %s2692_s6, %s2692_s6 }
 0x1e1   :  { %v2625_v10 = vpop.eup %2624  ;;  %v1527_v20 = vxor.u32 2147483648, %v2623_v41  ;;  %2414 = vmatprep.subr.bf16.mxu0 %v2569_v53 }
 0x1e2   :  { %v1524_v55 = vxor.u32 2147483648, %v2625_v10  ;;  %v1611_v57 = vand.u32 2147483647, %v1610_v63  ;;  %v1625_v26 = vand.u32 3, %v1624_v51  ;;  %p2699_p4 = por %p2698_p3, %p2697_p2 }
 0x1e3   :  { %v1528_v61 = vsel %vm1526_vm10, %v1527_v20, %v2625_v10 }
 0x1e4   :  { %v1525_v42 = vsel %vm1523_vm9, %v2623_v41, %v1524_v55  ;;  %v1614_v34 = vmul.f32 %v1613_v3, %v1611_v57  ;;  %2415 = vmatpush3.bf16.msra.mxu0 %v2570_v31  ;;  %vm1630_vm0 = vcmp.eq.s32.totalorder %v1625_v26, 2  ;;  %vm1627_vm6 = vcmp.eq.s32.totalorder %v1625_v26, 0  ;;  %p2700_p5 = pnand %p2699_p4, %p2693_p1 }
 0x1e5   :  { %v1529_v33 = vsel %vm1522_vm8, %v1525_v42, %v1528_v61  ;;  %2416 = vmatprep.subr.bf16.mxu0 %v2571_v36  ;;  %v2566_v48 = vld [vmem:[#allocation2 + $0xc] ss:$24 sps:$4 sm:$0xff]   ;;  %vm1626_vm11 = vcmp.lt.s32.totalorder %v1625_v26, 2 }
 0x1e6   :  { %v1530_v39 = vsel %vm1519_vm13, nan, %v1529_v33  ;;  %v1615_v52 = vxor.u32 2147483648, %v1614_v34  ;;  %2145 = vmatprep.mubr.bf16.mxu1 %v2566_v48 }
 0x1e7   :  { %v2362_v0 = vpack.c.bf16 %v1530_v39, %v1530_v39  ;;  %2146 = vmatmul.mubr.bf16.vlgmr.msra.gmra.mxu1 %v2564_v44 }
 0x1e8   :  { %v1616_v47 = vsel %vm1533_vm5, %v1615_v52, %v1614_v34  ;;  %2417 = vmatpush3.bf16.msra.mxu0 %v2572_v62 }
 0x1e9   :  { %1643 = vst [vmem:[#allocation2 + $0x14] sm:$0xf] %v2362_v0  ;;  %v1619_v56 = vsel %vm3992_vm4, %v3750_v18, %v1616_v47  ;;  %2418 = vmatprep.subr.bf16.mxu0 %v2573_v9 }
 0x1ea   :  { %2626 = vcosq.f32 %v1619_v56 }
 0x1eb   :  { %2628 = vsinq.f32 %v1619_v56 }
 0x1ec   :  { %2419 = vmatpush3.bf16.msra.mxu0 %v2574_v24 }
 0x1ed   :  { %2420 = vmatprep.subr.bf16.mxu0 %v2575_v60 }
 0x1f0   :  { %2421 = vmatpush3.bf16.msra.mxu0 %v2576_v2 }
 0x1f1   :  { %2422 = vmatprep.subr.bf16.mxu0 %v2577_v6 }
 0x1f4   :  { %2423 = vmatpush3.bf16.msra.mxu0 %v2578_v12 }
 0x1f7   :  { %v2627_v25 = vpop.eup %2626 }
 0x1f8   :  { %v2629_v28 = vpop.eup %2628  ;;  %v1631_v8 = vxor.u32 2147483648, %v2627_v25 }
 0x1f9   :  { %v1628_v4 = vxor.u32 2147483648, %v2629_v28 }
 0x1fa   :  { %v1632_v16 = vsel %vm1630_vm0, %v1631_v8, %v2629_v28 }
 0x1fb   :  { %v1629_v27 = vsel %vm1627_vm6, %v2627_v25, %v1628_v4 }
 0x1fc   :  { %v1633_v50 = vsel %vm1626_vm11, %v1629_v27, %v1632_v16 }
 0x1fd   :  { %v1634_v7 = vsel %vm1623_vm1, nan, %v1633_v50 }
 0x1fe   :  { %v2363_v45 = vpack.c.bf16 %v1634_v7, %v1634_v7 }
 0x200   :  { %1644 = vst [vmem:[#allocation2 + $0x2c] sm:$0xf] %v2363_v45 }
 0x207   :  { %v2581_v13 = vld [vmem:[#allocation2 + $0x14] ss:$24 sps:$4 sm:$0xff]  }
 0x208   :  { %2186 = vmatprep.mubr.bf16.mxu0 %v2581_v13 }
 0x209   :  { %2187 = vmatmul.mubr.bf16.vlgmr.msra.gmra.mxu0 %v2579_v35 }
 0x297   :  { %v2380_v37 = vpop.f32.mrf.mxu0 }
 0x299   :  { %v2381_v58 = vpop.f32.mrf.mxu0 }
 0x29a   :  { %v2382_v49 = vadd.f32 %v2381_v58, %v2380_v37 }
 0x29b   :  { %v2383_v21 = vpop.f32.mrf.mxu0 }
 0x29c   :  { %v2107_v19 = vadd.f32 %v2382_v49, %v2293_v22 }
 0x29d   :  { %v2384_v18 = vpop.f32.mrf.mxu0 }
 0x29e   :  { %v2385_v38 = vadd.f32 %v2384_v18, %v2383_v21 }
 0x2a0   :  { %v2110_v53 = vadd.f32 %v2385_v38, %v2293_v22 }
 0x2a7   :  { %v2402_v43 = vpop.f32.mrf.mxu1 }
 0x2a9   :  { %v2403_v23 = vpop.f32.mrf.mxu1 }
 0x2aa   :  { %v2404_v5 = vadd.f32 %v2403_v23, %v2402_v43 }
 0x2ab   :  { %v2405_v1 = vpop.f32.mrf.mxu1 }
 0x2ac   :  { %v2148_v46 = vadd.f32 %v2404_v5, %v2107_v19 }
 0x2ad   :  { %v2406_v17 = vpop.f32.mrf.mxu1 }
 0x2ae   :  { %v2407_v59 = vadd.f32 %v2406_v17, %v2405_v1 }
 0x2b0   :  { %v2151_v10 = vadd.f32 %v2407_v59, %v2110_v53 }
 0x2c9   :  { %v2424_v14 = vpop.f32.mrf.mxu0 }
 0x2cb   :  { %v2425_v32 = vpop.f32.mrf.mxu0 }
 0x2cc   :  { %v2426_v40 = vadd.f32 %v2425_v32, %v2424_v14 }
 0x2cd   :  { %v2427_v29 = vpop.f32.mrf.mxu0 }
 0x2ce   :  { %v2189_v41 = vadd.f32 %v2426_v40, %v2148_v46 }
 0x2cf   :  { %v2428_v63 = vpop.f32.mrf.mxu0 }
 0x2d0   :  { %2195 = vst [vmem:[#allocation9] sm:$0xff] %v2189_v41  ;;  %v2429_v20 = vadd.f32 %v2428_v63, %v2427_v29 }
 0x2d2   :  { %v2192_v55 = vadd.f32 %v2429_v20, %v2151_v10 }
 0x2d4   :  { %2196 = vst [vmem:[#allocation9 + $0x8] sm:$0xff] %v2192_v55 }
 0x2d5   :  { %2703 = shalt.err (!%p2700_p5)
}
 0x2d6   :  { %2208 = dma.vmem_to_hbm [thread:$0]  %s2203_s15, 256, %s4021_s7, [#allocation5], %s2720_s9, %s2720_s9, %s2721_s10  }
 0x2d7   :  { %2716 = dma.done.wait [#allocation5], 256  }
 0x2d8   :  { %2717 = vsyncadd [#allocation5], 4294967040 }
 0x2d9   :  { %2212 = vsyncpa [#allocation4], 1 }
 0x2da   :  { %2213 = vsyncpa [#allocation7], 1 }
 0x2db   :  { %2214 = vsyncpa [#allocation5], 1 }

</bundles_post_ra>
